<compile_context>
chip_gen: v7x
topology: tpu7x:2x2x1
jax: 0.10.0
libtpu: 0.0.40
codegen_flags: <defaults>
</compile_context>

<pallas_src>
import jax
import jax.numpy as jnp
import numpy as np
from jax import lax
from jax.experimental import pallas as pl
from jax.experimental.pallas import tpu as pltpu


def _round_up(x, m):
    return (x + m - 1) // m * m


def _pick_chunk(T, max_chunk):
    # Largest divisor of T that is <= max_chunk (amortizes per-grid-step overhead
    # without needing remainder masking inside the kernel).
    for c in range(min(T, max_chunk), 0, -1):
        if T % c == 0:
            return c
    return 1


def _sigmoid_via_tanh(x):
    # sigmoid(x) == 0.5 * (tanh(x/2) + 1): one EUP op instead of exp + reciprocal.
    return 0.5 * jnp.tanh(0.5 * x) + 0.5


def lstm_recurrence_kernel(pg_ref, whh_ref, h_out_ref, h_scr, c_scr):
    """Sequential LSTM recurrence over one chunk of Tc timesteps.

    pg_ref   : (Tc, Bb, 4*Hp)  precomputed x@W_ih + b for this chunk (time-major)
    whh_ref  : (Hp, 4*Hp)      recurrent weights (VMEM-resident, constant index)
    h_out_ref: (Bb, Hp)        final hidden state (written on the last chunk only)
    h_scr/c_scr: (Bb, Hp)      carried state across time chunks (f32)
    """
    ti = pl.program_id(1)
    n_t = pl.num_programs(1)
    Tc = pg_ref.shape[0]
    Hp = h_scr.shape[-1]

    @pl.when(ti == 0)
    def _():
        h_scr[...] = jnp.zeros_like(h_scr)
        c_scr[...] = jnp.zeros_like(c_scr)

    whh = whh_ref[...]          # hoisted: one VMEM load per grid step

    def step(tt, carry):
        h, c = carry
        gates = pg_ref[tt] + jnp.dot(h, whh, preferred_element_type=jnp.float32)
        # Lane-aligned gate slabs (Hp is a multiple of 128); PyTorch order [i,f,g,o].
        i_g = _sigmoid_via_tanh(gates[:, 0 * Hp:1 * Hp])
        f_g = _sigmoid_via_tanh(gates[:, 1 * Hp:2 * Hp])
        g_g = jnp.tanh(gates[:, 2 * Hp:3 * Hp])
        o_g = _sigmoid_via_tanh(gates[:, 3 * Hp:4 * Hp])
        c_new = f_g * c + i_g * g_g
        h_new = o_g * jnp.tanh(c_new)
        return (h_new, c_new)

    h, c = lax.fori_loop(0, Tc, step, (h_scr[...], c_scr[...]), unroll=True)

    @pl.when(ti < n_t - 1)
    def _():
        # Carry state to the next time chunk (skipped on the final chunk).
        h_scr[...] = h
        c_scr[...] = c

    @pl.when(ti == n_t - 1)
    def _():
        h_out_ref[...] = h.astype(h_out_ref.dtype)


def lstm_pallas(x, w_ih, w_hh, b_ih, b_hh, *, max_chunk=32):
    """x: (B, T, E); weights in PyTorch layout w_ih (4H, E), w_hh (4H, H).

    Returns the final hidden state, shape (B, H) — i.e. hidden.view(-1, H).
    """
    B, T, E = x.shape
    H4 = w_ih.shape[0]
    H = H4 // 4
    f32 = jnp.float32

    # ---- padding: full sublanes on batch, lane-aligned per-gate slabs --------
    Hp = _round_up(H, 128)                      # per-gate lane alignment
    Bp = _round_up(B, 8)                        # fill sublanes
    if Bp > 128:                                # shard large batches across blocks
        Bb = 128
        Bp = _round_up(Bp, Bb)
    else:
        Bb = Bp

    # Choose the time chunk: largest divisor of T that also keeps the
    # double-buffered pre-gate tile within a modest VMEM budget.
    bytes_per_timestep = Bb * 4 * Hp * 4        # f32 pre-gates per timestep
    vmem_budget = 12 * 1024 * 1024              # for the double-buffered input tile
    max_chunk_by_vmem = max(1, vmem_budget // (2 * bytes_per_timestep))
    Tc = _pick_chunk(T, min(max_chunk, max_chunk_by_vmem))

    pad_h = Hp - H

    # Repack weights/bias with per-gate zero padding H -> Hp (keeps math exact:
    # padded gate lanes get pre-activation 0 -> c_pad, h_pad stay exactly 0).
    wih_g = jnp.pad(w_ih.reshape(4, H, E).astype(f32), ((0, 0), (0, pad_h), (0, 0)))
    whh_g = jnp.pad(w_hh.reshape(4, H, H).astype(f32), ((0, 0), (0, pad_h), (0, pad_h)))
    b_g = jnp.pad((b_ih + b_hh).reshape(4, H).astype(f32), ((0, 0), (0, pad_h)))

    wih_T = jnp.transpose(wih_g, (2, 0, 1)).reshape(E, 4 * Hp)     # (E, 4Hp)
    whh_T = jnp.transpose(whh_g, (2, 0, 1)).reshape(Hp, 4 * Hp)    # (Hp, 4Hp)
    b_flat = b_g.reshape(4 * Hp)

    x_p = jnp.pad(x.astype(f32), ((0, Bp - B), (0, 0), (0, 0)))    # (Bp, T, E)

    # ---- hoisted input projection: one big MXU-friendly matmul --------------
    # Emitted directly in time-major layout so the recurrence consumes
    # contiguous (Tc, Bb, 4Hp) tiles without an extra HBM transpose pass of x.
    pre_gates = jnp.einsum('bte,eg->tbg', x_p, wih_T,
                           preferred_element_type=f32) + b_flat    # (T, Bp, 4Hp)

    grid = (Bp // Bb, T // Tc)

    hidden = pl.pallas_call(
        lstm_recurrence_kernel,
        out_shape=jax.ShapeDtypeStruct((Bp, Hp), x.dtype),
        grid_spec=pltpu.PrefetchScalarGridSpec(
            num_scalar_prefetch=0,
            grid=grid,
            in_specs=[
                pl.BlockSpec((Tc, Bb, 4 * Hp), lambda bi, ti: (ti, bi, 0)),
                pl.BlockSpec((Hp, 4 * Hp), lambda bi, ti: (0, 0)),
            ],
            out_specs=pl.BlockSpec((Bb, Hp), lambda bi, ti: (bi, 0)),
            scratch_shapes=[
                pltpu.VMEM((Bb, Hp), jnp.float32),   # h state
                pltpu.VMEM((Bb, Hp), jnp.float32),   # c state
            ],
        ),
        compiler_params=pltpu.CompilerParams(
            # Batch blocks are independent (megacore-parallel); the time
            # recurrence is strictly sequential -> "arbitrary", last axis.
            dimension_semantics=("parallel", "arbitrary"),
            vmem_limit_bytes=32 * 1024 * 1024,
        ),
    )(pre_gates, whh_T)

    return hidden[:B, :H]


def lstm_ref(x, w_ih, w_hh, b_ih, b_hh):
    """Pure-JAX reference (same math as torch.nn.LSTM forward, 1 layer)."""
    B, T, E = x.shape
    H = w_hh.shape[1]
    b = b_ih + b_hh

    def step(carry, x_t):
        h, c = carry
        gates = x_t @ w_ih.T + h @ w_hh.T + b
        i_g = jax.nn.sigmoid(gates[:, 0 * H:1 * H])
        f_g = jax.nn.sigmoid(gates[:, 1 * H:2 * H])
        g_g = jnp.tanh(gates[:, 2 * H:3 * H])
        o_g = jax.nn.sigmoid(gates[:, 3 * H:4 * H])
        c_new = f_g * c + i_g * g_g
        h_new = o_g * jnp.tanh(c_new)
        return (h_new, c_new), h_new

    h0 = jnp.zeros((B, H), x.dtype)
    c0 = jnp.zeros((B, H), x.dtype)
    (h_final, _), _ = lax.scan(step, (h0, c0), jnp.transpose(x, (1, 0, 2)))
    return h_final


if __name__ == "__main__":
    key = jax.random.PRNGKey(0)

    def make_inputs(k, B, T, E, H):
        kx, k1, k2, k3, k4 = jax.random.split(k, 5)
        bound = 1.0 / np.sqrt(H)
        x = jax.random.normal(kx, (B, T, E), dtype=jnp.float32)
        w_ih = jax.random.uniform(k1, (4 * H, E), jnp.float32, -bound, bound)
        w_hh = jax.random.uniform(k2, (4 * H, H), jnp.float32, -bound, bound)
        b_ih = jax.random.uniform(k3, (4 * H,), jnp.float32, -bound, bound)
        b_hh = jax.random.uniform(k4, (4 * H,), jnp.float32, -bound, bound)
        return x, w_ih, w_hh, b_ih, b_hh

    kA, kB = jax.random.split(key)
    # Primary small config: batch=2, seq=8, embedding_dim=32, hidden_dim=32.
    # Second config exercises non-trivial batch / hidden padding and multi-chunk
    # time iteration paths.
    for kk, (B, T, E, H) in ((kA, (2, 8, 32, 32)), (kB, (3, 6, 24, 48))):
        args = make_inputs(kk, B, T, E, H)
        out = jax.block_until_ready(lstm_pallas(*args))
        ref = jax.block_until_ready(lstm_ref(*args))
        assert out.shape == (B, H), out.shape
        np.testing.assert_allclose(np.asarray(out), np.asarray(ref),
                                   rtol=1e-4, atol=1e-4)

    print("KERNEL_OK")
</pallas_src>

<mosaic_0001>
module attributes {stable_mosaic.version = 11 : i64} {
  func.func @lstm_recurrence_kernel(%arg0: i32, %arg1: i32, %arg2: memref<8x8x512xf32, #tpu.memory_space<vmem>>, %arg3: memref<128x512xf32, #tpu.memory_space<vmem>>, %arg4: memref<8x128xf32, #tpu.memory_space<vmem>>, %arg5: memref<8x128xf32, #tpu.memory_space<vmem>>, %arg6: memref<8x128xf32, #tpu.memory_space<vmem>>) attributes {dimension_semantics = [#tpu.dimension_semantics<parallel>, #tpu.dimension_semantics<arbitrary>], iteration_bounds = array<i64: 1, 1>, scalar_prefetch = 0 : i64, scratch_operands = 2 : i64, tpu.core_type = #tpu.core_type<tc>, window_params = [{transform_indices = @transform_0, window_bounds = array<i64: 8, 8, 512>}, {pipeline_mode = #tpu.pipeline_mode<synchronous>, transform_indices = @transform_1, window_bounds = array<i64: 128, 512>}, {transform_indices = @transform_2, window_bounds = array<i64: 8, 128>}]} {
    %c0_i32 = arith.constant 0 : i32
    %0 = arith.cmpi eq, %arg1, %c0_i32 : i32
    %1 = arith.extui %0 : i1 to i32
    %c0_i32_0 = arith.constant 0 : i32
    %2 = arith.cmpi ne, %1, %c0_i32_0 : i32
    scf.if %2 {
      %cst_106 = arith.constant 0.000000e+00 : f32
      %300 = vector.broadcast %cst_106 : f32 to vector<8x128xf32>
      %c0_107 = arith.constant 0 : index
      %c0_108 = arith.constant 0 : index
      %301 = vector.load %arg5[%c0_107, %c0_108] : memref<8x128xf32, #tpu.memory_space<vmem>>, vector<8x128xf32>
      tpu.vector_store %arg5[%c0_107, %c0_108], %300 {strides = array<i32>} : memref<8x128xf32, #tpu.memory_space<vmem>>, vector<8x128xf32>,
      %cst_109 = arith.constant 0.000000e+00 : f32
      %302 = vector.broadcast %cst_109 : f32 to vector<8x128xf32>
      %c0_110 = arith.constant 0 : index
      %c0_111 = arith.constant 0 : index
      %303 = vector.load %arg6[%c0_110, %c0_111] : memref<8x128xf32, #tpu.memory_space<vmem>>, vector<8x128xf32>
      tpu.vector_store %arg6[%c0_110, %c0_111], %302 {strides = array<i32>} : memref<8x128xf32, #tpu.memory_space<vmem>>, vector<8x128xf32>,
    } else {
    }
    %c0 = arith.constant 0 : index
    %c0_1 = arith.constant 0 : index
    %3 = vector.load %arg3[%c0, %c0_1] : memref<128x512xf32, #tpu.memory_space<vmem>>, vector<128x512xf32>
    %c0_2 = arith.constant 0 : index
    %c0_3 = arith.constant 0 : index
    %4 = vector.load %arg5[%c0_2, %c0_3] : memref<8x128xf32, #tpu.memory_space<vmem>>, vector<8x128xf32>
    %c0_4 = arith.constant 0 : index
    %c0_5 = arith.constant 0 : index
    %5 = vector.load %arg6[%c0_4, %c0_5] : memref<8x128xf32, #tpu.memory_space<vmem>>, vector<8x128xf32>
    %c0_i32_6 = arith.constant 0 : i32
    %6 = arith.index_cast %c0_i32_6 : i32 to index
    %c0_7 = arith.constant 0 : index
    %c0_8 = arith.constant 0 : index
    %7 = vector.load %arg2[%6, %c0_7, %c0_8] : memref<8x8x512xf32, #tpu.memory_space<vmem>>, vector<1x8x512xf32>
    %8 = vector.shape_cast %7 : vector<1x8x512xf32> to vector<8x512xf32>
    %cst = arith.constant dense<0.000000e+00> : vector<8x512xf32>
    %9 = tpu.matmul %4, %3, %cst {dimension_numbers = #tpu.dot_dimension_numbers<[1], [0], [0], [1], [0, 0, 1, 1], [], []>} : vector<8x128xf32>, vector<128x512xf32>, vector<8x512xf32> -> vector<8x512xf32>
    %10 = arith.addf %8, %9 : vector<8x512xf32>
    %11 = vector.extract_strided_slice %10 {offsets = [0, 0], sizes = [8, 128], strides = [1, 1]} : vector<8x512xf32> to vector<8x128xf32>
    %cst_9 = arith.constant 5.000000e-01 : f32
    %12 = vector.broadcast %cst_9 : f32 to vector<8x128xf32>
    %13 = arith.mulf %12, %11 : vector<8x128xf32>
    %14 = math.tanh %13 : vector<8x128xf32>
    %cst_10 = arith.constant 5.000000e-01 : f32
    %15 = vector.broadcast %cst_10 : f32 to vector<8x128xf32>
    %16 = arith.mulf %15, %14 : vector<8x128xf32>
    %cst_11 = arith.constant 5.000000e-01 : f32
    %17 = vector.broadcast %cst_11 : f32 to vector<8x128xf32>
    %18 = arith.addf %16, %17 : vector<8x128xf32>
    %19 = vector.extract_strided_slice %10 {offsets = [0, 128], sizes = [8, 128], strides = [1, 1]} : vector<8x512xf32> to vector<8x128xf32>
    %cst_12 = arith.constant 5.000000e-01 : f32
    %20 = vector.broadcast %cst_12 : f32 to vector<8x128xf32>
    %21 = arith.mulf %20, %19 : vector<8x128xf32>
    %22 = math.tanh %21 : vector<8x128xf32>
    %cst_13 = arith.constant 5.000000e-01 : f32
    %23 = vector.broadcast %cst_13 : f32 to vector<8x128xf32>
    %24 = arith.mulf %23, %22 : vector<8x128xf32>
    %cst_14 = arith.constant 5.000000e-01 : f32
    %25 = vector.broadcast %cst_14 : f32 to vector<8x128xf32>
    %26 = arith.addf %24, %25 : vector<8x128xf32>
    %27 = vector.extract_strided_slice %10 {offsets = [0, 256], sizes = [8, 128], strides = [1, 1]} : vector<8x512xf32> to vector<8x128xf32>
    %28 = math.tanh %27 : vector<8x128xf32>
    %29 = vector.extract_strided_slice %10 {offsets = [0, 384], sizes = [8, 128], strides = [1, 1]} : vector<8x512xf32> to vector<8x128xf32>
    %cst_15 = arith.constant 5.000000e-01 : f32
    %30 = vector.broadcast %cst_15 : f32 to vector<8x128xf32>
    %31 = arith.mulf %30, %29 : vector<8x128xf32>
    %32 = math.tanh %31 : vector<8x128xf32>
    %cst_16 = arith.constant 5.000000e-01 : f32
    %33 = vector.broadcast %cst_16 : f32 to vector<8x128xf32>
    %34 = arith.mulf %33, %32 : vector<8x128xf32>
    %cst_17 = arith.constant 5.000000e-01 : f32
    %35 = vector.broadcast %cst_17 : f32 to vector<8x128xf32>
    %36 = arith.addf %34, %35 : vector<8x128xf32>
    %37 = arith.mulf %26, %5 : vector<8x128xf32>
    %38 = arith.mulf %18, %28 : vector<8x128xf32>
    %39 = arith.addf %37, %38 : vector<8x128xf32>
    %40 = math.tanh %39 : vector<8x128xf32>
    %41 = arith.mulf %36, %40 : vector<8x128xf32>
    %c1_i32 = arith.constant 1 : i32
    %42 = arith.index_cast %c1_i32 : i32 to index
    %c0_18 = arith.constant 0 : index
    %c0_19 = arith.constant 0 : index
    %43 = vector.load %arg2[%42, %c0_18, %c0_19] : memref<8x8x512xf32, #tpu.memory_space<vmem>>, vector<1x8x512xf32>
    %44 = vector.shape_cast %43 : vector<1x8x512xf32> to vector<8x512xf32>
    %cst_20 = arith.constant dense<0.000000e+00> : vector<8x512xf32>
    %45 = tpu.matmul %41, %3, %cst_20 {dimension_numbers = #tpu.dot_dimension_numbers<[1], [0], [0], [1], [0, 0, 1, 1], [], []>} : vector<8x128xf32>, vector<128x512xf32>, vector<8x512xf32> -> vector<8x512xf32>
    %46 = arith.addf %44, %45 : vector<8x512xf32>
    %47 = vector.extract_strided_slice %46 {offsets = [0, 0], sizes = [8, 128], strides = [1, 1]} : vector<8x512xf32> to vector<8x128xf32>
    %cst_21 = arith.constant 5.000000e-01 : f32
    %48 = vector.broadcast %cst_21 : f32 to vector<8x128xf32>
    %49 = arith.mulf %48, %47 : vector<8x128xf32>
    %50 = math.tanh %49 : vector<8x128xf32>
    %cst_22 = arith.constant 5.000000e-01 : f32
    %51 = vector.broadcast %cst_22 : f32 to vector<8x128xf32>
    %52 = arith.mulf %51, %50 : vector<8x128xf32>
    %cst_23 = arith.constant 5.000000e-01 : f32
    %53 = vector.broadcast %cst_23 : f32 to vector<8x128xf32>
    %54 = arith.addf %52, %53 : vector<8x128xf32>
    %55 = vector.extract_strided_slice %46 {offsets = [0, 128], sizes = [8, 128], strides = [1, 1]} : vector<8x512xf32> to vector<8x128xf32>
    %cst_24 = arith.constant 5.000000e-01 : f32
    %56 = vector.broadcast %cst_24 : f32 to vector<8x128xf32>
    %57 = arith.mulf %56, %55 : vector<8x128xf32>
    %58 = math.tanh %57 : vector<8x128xf32>
    %cst_25 = arith.constant 5.000000e-01 : f32
    %59 = vector.broadcast %cst_25 : f32 to vector<8x128xf32>
    %60 = arith.mulf %59, %58 : vector<8x128xf32>
    %cst_26 = arith.constant 5.000000e-01 : f32
    %61 = vector.broadcast %cst_26 : f32 to vector<8x128xf32>
    %62 = arith.addf %60, %61 : vector<8x128xf32>
    %63 = vector.extract_strided_slice %46 {offsets = [0, 256], sizes = [8, 128], strides = [1, 1]} : vector<8x512xf32> to vector<8x128xf32>
    %64 = math.tanh %63 : vector<8x128xf32>
    %65 = vector.extract_strided_slice %46 {offsets = [0, 384], sizes = [8, 128], strides = [1, 1]} : vector<8x512xf32> to vector<8x128xf32>
    %cst_27 = arith.constant 5.000000e-01 : f32
    %66 = vector.broadcast %cst_27 : f32 to vector<8x128xf32>
    %67 = arith.mulf %66, %65 : vector<8x128xf32>
    %68 = math.tanh %67 : vector<8x128xf32>
    %cst_28 = arith.constant 5.000000e-01 : f32
    %69 = vector.broadcast %cst_28 : f32 to vector<8x128xf32>
    %70 = arith.mulf %69, %68 : vector<8x128xf32>
    %cst_29 = arith.constant 5.000000e-01 : f32
    %71 = vector.broadcast %cst_29 : f32 to vector<8x128xf32>
    %72 = arith.addf %70, %71 : vector<8x128xf32>
    %73 = arith.mulf %62, %39 : vector<8x128xf32>
    %74 = arith.mulf %54, %64 : vector<8x128xf32>
    %75 = arith.addf %73, %74 : vector<8x128xf32>
    %76 = math.tanh %75 : vector<8x128xf32>
    %77 = arith.mulf %72, %76 : vector<8x128xf32>
    %c2_i32 = arith.constant 2 : i32
    %78 = arith.index_cast %c2_i32 : i32 to index
    %c0_30 = arith.constant 0 : index
    %c0_31 = arith.constant 0 : index
    %79 = vector.load %arg2[%78, %c0_30, %c0_31] : memref<8x8x512xf32, #tpu.memory_space<vmem>>, vector<1x8x512xf32>
    %80 = vector.shape_cast %79 : vector<1x8x512xf32> to vector<8x512xf32>
    %cst_32 = arith.constant dense<0.000000e+00> : vector<8x512xf32>
    %81 = tpu.matmul %77, %3, %cst_32 {dimension_numbers = #tpu.dot_dimension_numbers<[1], [0], [0], [1], [0, 0, 1, 1], [], []>} : vector<8x128xf32>, vector<128x512xf32>, vector<8x512xf32> -> vector<8x512xf32>
    %82 = arith.addf %80, %81 : vector<8x512xf32>
    %83 = vector.extract_strided_slice %82 {offsets = [0, 0], sizes = [8, 128], strides = [1, 1]} : vector<8x512xf32> to vector<8x128xf32>
    %cst_33 = arith.constant 5.000000e-01 : f32
    %84 = vector.broadcast %cst_33 : f32 to vector<8x128xf32>
    %85 = arith.mulf %84, %83 : vector<8x128xf32>
    %86 = math.tanh %85 : vector<8x128xf32>
    %cst_34 = arith.constant 5.000000e-01 : f32
    %87 = vector.broadcast %cst_34 : f32 to vector<8x128xf32>
    %88 = arith.mulf %87, %86 : vector<8x128xf32>
    %cst_35 = arith.constant 5.000000e-01 : f32
    %89 = vector.broadcast %cst_35 : f32 to vector<8x128xf32>
    %90 = arith.addf %88, %89 : vector<8x128xf32>
    %91 = vector.extract_strided_slice %82 {offsets = [0, 128], sizes = [8, 128], strides = [1, 1]} : vector<8x512xf32> to vector<8x128xf32>
    %cst_36 = arith.constant 5.000000e-01 : f32
    %92 = vector.broadcast %cst_36 : f32 to vector<8x128xf32>
    %93 = arith.mulf %92, %91 : vector<8x128xf32>
    %94 = math.tanh %93 : vector<8x128xf32>
    %cst_37 = arith.constant 5.000000e-01 : f32
    %95 = vector.broadcast %cst_37 : f32 to vector<8x128xf32>
    %96 = arith.mulf %95, %94 : vector<8x128xf32>
    %cst_38 = arith.constant 5.000000e-01 : f32
    %97 = vector.broadcast %cst_38 : f32 to vector<8x128xf32>
    %98 = arith.addf %96, %97 : vector<8x128xf32>
    %99 = vector.extract_strided_slice %82 {offsets = [0, 256], sizes = [8, 128], strides = [1, 1]} : vector<8x512xf32> to vector<8x128xf32>
    %100 = math.tanh %99 : vector<8x128xf32>
    %101 = vector.extract_strided_slice %82 {offsets = [0, 384], sizes = [8, 128], strides = [1, 1]} : vector<8x512xf32> to vector<8x128xf32>
    %cst_39 = arith.constant 5.000000e-01 : f32
    %102 = vector.broadcast %cst_39 : f32 to vector<8x128xf32>
    %103 = arith.mulf %102, %101 : vector<8x128xf32>
    %104 = math.tanh %103 : vector<8x128xf32>
    %cst_40 = arith.constant 5.000000e-01 : f32
    %105 = vector.broadcast %cst_40 : f32 to vector<8x128xf32>
    %106 = arith.mulf %105, %104 : vector<8x128xf32>
    %cst_41 = arith.constant 5.000000e-01 : f32
    %107 = vector.broadcast %cst_41 : f32 to vector<8x128xf32>
    %108 = arith.addf %106, %107 : vector<8x128xf32>
    %109 = arith.mulf %98, %75 : vector<8x128xf32>
    %110 = arith.mulf %90, %100 : vector<8x128xf32>
    %111 = arith.addf %109, %110 : vector<8x128xf32>
    %112 = math.tanh %111 : vector<8x128xf32>
    %113 = arith.mulf %108, %112 : vector<8x128xf32>
    %c3_i32 = arith.constant 3 : i32
    %114 = arith.index_cast %c3_i32 : i32 to index
    %c0_42 = arith.constant 0 : index
    %c0_43 = arith.constant 0 : index
    %115 = vector.load %arg2[%114, %c0_42, %c0_43] : memref<8x8x512xf32, #tpu.memory_space<vmem>>, vector<1x8x512xf32>
    %116 = vector.shape_cast %115 : vector<1x8x512xf32> to vector<8x512xf32>
    %cst_44 = arith.constant dense<0.000000e+00> : vector<8x512xf32>
    %117 = tpu.matmul %113, %3, %cst_44 {dimension_numbers = #tpu.dot_dimension_numbers<[1], [0], [0], [1], [0, 0, 1, 1], [], []>} : vector<8x128xf32>, vector<128x512xf32>, vector<8x512xf32> -> vector<8x512xf32>
    %118 = arith.addf %116, %117 : vector<8x512xf32>
    %119 = vector.extract_strided_slice %118 {offsets = [0, 0], sizes = [8, 128], strides = [1, 1]} : vector<8x512xf32> to vector<8x128xf32>
    %cst_45 = arith.constant 5.000000e-01 : f32
    %120 = vector.broadcast %cst_45 : f32 to vector<8x128xf32>
    %121 = arith.mulf %120, %119 : vector<8x128xf32>
    %122 = math.tanh %121 : vector<8x128xf32>
    %cst_46 = arith.constant 5.000000e-01 : f32
    %123 = vector.broadcast %cst_46 : f32 to vector<8x128xf32>
    %124 = arith.mulf %123, %122 : vector<8x128xf32>
    %cst_47 = arith.constant 5.000000e-01 : f32
    %125 = vector.broadcast %cst_47 : f32 to vector<8x128xf32>
    %126 = arith.addf %124, %125 : vector<8x128xf32>
    %127 = vector.extract_strided_slice %118 {offsets = [0, 128], sizes = [8, 128], strides = [1, 1]} : vector<8x512xf32> to vector<8x128xf32>
    %cst_48 = arith.constant 5.000000e-01 : f32
    %128 = vector.broadcast %cst_48 : f32 to vector<8x128xf32>
    %129 = arith.mulf %128, %127 : vector<8x128xf32>
    %130 = math.tanh %129 : vector<8x128xf32>
    %cst_49 = arith.constant 5.000000e-01 : f32
    %131 = vector.broadcast %cst_49 : f32 to vector<8x128xf32>
    %132 = arith.mulf %131, %130 : vector<8x128xf32>
    %cst_50 = arith.constant 5.000000e-01 : f32
    %133 = vector.broadcast %cst_50 : f32 to vector<8x128xf32>
    %134 = arith.addf %132, %133 : vector<8x128xf32>
    %135 = vector.extract_strided_slice %118 {offsets = [0, 256], sizes = [8, 128], strides = [1, 1]} : vector<8x512xf32> to vector<8x128xf32>
    %136 = math.tanh %135 : vector<8x128xf32>
    %137 = vector.extract_strided_slice %118 {offsets = [0, 384], sizes = [8, 128], strides = [1, 1]} : vector<8x512xf32> to vector<8x128xf32>
    %cst_51 = arith.constant 5.000000e-01 : f32
    %138 = vector.broadcast %cst_51 : f32 to vector<8x128xf32>
    %139 = arith.mulf %138, %137 : vector<8x128xf32>
    %140 = math.tanh %139 : vector<8x128xf32>
    %cst_52 = arith.constant 5.000000e-01 : f32
    %141 = vector.broadcast %cst_52 : f32 to vector<8x128xf32>
    %142 = arith.mulf %141, %140 : vector<8x128xf32>
    %cst_53 = arith.constant 5.000000e-01 : f32
    %143 = vector.broadcast %cst_53 : f32 to vector<8x128xf32>
    %144 = arith.addf %142, %143 : vector<8x128xf32>
    %145 = arith.mulf %134, %111 : vector<8x128xf32>
    %146 = arith.mulf %126, %136 : vector<8x128xf32>
    %147 = arith.addf %145, %146 : vector<8x128xf32>
    %148 = math.tanh %147 : vector<8x128xf32>
    %149 = arith.mulf %144, %148 : vector<8x128xf32>
    %c4_i32 = arith.constant 4 : i32
    %150 = arith.index_cast %c4_i32 : i32 to index
    %c0_54 = arith.constant 0 : index
    %c0_55 = arith.constant 0 : index
    %151 = vector.load %arg2[%150, %c0_54, %c0_55] : memref<8x8x512xf32, #tpu.memory_space<vmem>>, vector<1x8x512xf32>
    %152 = vector.shape_cast %151 : vector<1x8x512xf32> to vector<8x512xf32>
    %cst_56 = arith.constant dense<0.000000e+00> : vector<8x512xf32>
    %153 = tpu.matmul %149, %3, %cst_56 {dimension_numbers = #tpu.dot_dimension_numbers<[1], [0], [0], [1], [0, 0, 1, 1], [], []>} : vector<8x128xf32>, vector<128x512xf32>, vector<8x512xf32> -> vector<8x512xf32>
    %154 = arith.addf %152, %153 : vector<8x512xf32>
    %155 = vector.extract_strided_slice %154 {offsets = [0, 0], sizes = [8, 128], strides = [1, 1]} : vector<8x512xf32> to vector<8x128xf32>
    %cst_57 = arith.constant 5.000000e-01 : f32
    %156 = vector.broadcast %cst_57 : f32 to vector<8x128xf32>
    %157 = arith.mulf %156, %155 : vector<8x128xf32>
    %158 = math.tanh %157 : vector<8x128xf32>
    %cst_58 = arith.constant 5.000000e-01 : f32
    %159 = vector.broadcast %cst_58 : f32 to vector<8x128xf32>
    %160 = arith.mulf %159, %158 : vector<8x128xf32>
    %cst_59 = arith.constant 5.000000e-01 : f32
    %161 = vector.broadcast %cst_59 : f32 to vector<8x128xf32>
    %162 = arith.addf %160, %161 : vector<8x128xf32>
    %163 = vector.extract_strided_slice %154 {offsets = [0, 128], sizes = [8, 128], strides = [1, 1]} : vector<8x512xf32> to vector<8x128xf32>
    %cst_60 = arith.constant 5.000000e-01 : f32
    %164 = vector.broadcast %cst_60 : f32 to vector<8x128xf32>
    %165 = arith.mulf %164, %163 : vector<8x128xf32>
    %166 = math.tanh %165 : vector<8x128xf32>
    %cst_61 = arith.constant 5.000000e-01 : f32
    %167 = vector.broadcast %cst_61 : f32 to vector<8x128xf32>
    %168 = arith.mulf %167, %166 : vector<8x128xf32>
    %cst_62 = arith.constant 5.000000e-01 : f32
    %169 = vector.broadcast %cst_62 : f32 to vector<8x128xf32>
    %170 = arith.addf %168, %169 : vector<8x128xf32>
    %171 = vector.extract_strided_slice %154 {offsets = [0, 256], sizes = [8, 128], strides = [1, 1]} : vector<8x512xf32> to vector<8x128xf32>
    %172 = math.tanh %171 : vector<8x128xf32>
    %173 = vector.extract_strided_slice %154 {offsets = [0, 384], sizes = [8, 128], strides = [1, 1]} : vector<8x512xf32> to vector<8x128xf32>
    %cst_63 = arith.constant 5.000000e-01 : f32
    %174 = vector.broadcast %cst_63 : f32 to vector<8x128xf32>
    %175 = arith.mulf %174, %173 : vector<8x128xf32>
    %176 = math.tanh %175 : vector<8x128xf32>
    %cst_64 = arith.constant 5.000000e-01 : f32
    %177 = vector.broadcast %cst_64 : f32 to vector<8x128xf32>
    %178 = arith.mulf %177, %176 : vector<8x128xf32>
    %cst_65 = arith.constant 5.000000e-01 : f32
    %179 = vector.broadcast %cst_65 : f32 to vector<8x128xf32>
    %180 = arith.addf %178, %179 : vector<8x128xf32>
    %181 = arith.mulf %170, %147 : vector<8x128xf32>
    %182 = arith.mulf %162, %172 : vector<8x128xf32>
    %183 = arith.addf %181, %182 : vector<8x128xf32>
    %184 = math.tanh %183 : vector<8x128xf32>
    %185 = arith.mulf %180, %184 : vector<8x128xf32>
    %c5_i32 = arith.constant 5 : i32
    %186 = arith.index_cast %c5_i32 : i32 to index
    %c0_66 = arith.constant 0 : index
    %c0_67 = arith.constant 0 : index
    %187 = vector.load %arg2[%186, %c0_66, %c0_67] : memref<8x8x512xf32, #tpu.memory_space<vmem>>, vector<1x8x512xf32>
    %188 = vector.shape_cast %187 : vector<1x8x512xf32> to vector<8x512xf32>
    %cst_68 = arith.constant dense<0.000000e+00> : vector<8x512xf32>
    %189 = tpu.matmul %185, %3, %cst_68 {dimension_numbers = #tpu.dot_dimension_numbers<[1], [0], [0], [1], [0, 0, 1, 1], [], []>} : vector<8x128xf32>, vector<128x512xf32>, vector<8x512xf32> -> vector<8x512xf32>
    %190 = arith.addf %188, %189 : vector<8x512xf32>
    %191 = vector.extract_strided_slice %190 {offsets = [0, 0], sizes = [8, 128], strides = [1, 1]} : vector<8x512xf32> to vector<8x128xf32>
    %cst_69 = arith.constant 5.000000e-01 : f32
    %192 = vector.broadcast %cst_69 : f32 to vector<8x128xf32>
    %193 = arith.mulf %192, %191 : vector<8x128xf32>
    %194 = math.tanh %193 : vector<8x128xf32>
    %cst_70 = arith.constant 5.000000e-01 : f32
    %195 = vector.broadcast %cst_70 : f32 to vector<8x128xf32>
    %196 = arith.mulf %195, %194 : vector<8x128xf32>
    %cst_71 = arith.constant 5.000000e-01 : f32
    %197 = vector.broadcast %cst_71 : f32 to vector<8x128xf32>
    %198 = arith.addf %196, %197 : vector<8x128xf32>
    %199 = vector.extract_strided_slice %190 {offsets = [0, 128], sizes = [8, 128], strides = [1, 1]} : vector<8x512xf32> to vector<8x128xf32>
    %cst_72 = arith.constant 5.000000e-01 : f32
    %200 = vector.broadcast %cst_72 : f32 to vector<8x128xf32>
    %201 = arith.mulf %200, %199 : vector<8x128xf32>
    %202 = math.tanh %201 : vector<8x128xf32>
    %cst_73 = arith.constant 5.000000e-01 : f32
    %203 = vector.broadcast %cst_73 : f32 to vector<8x128xf32>
    %204 = arith.mulf %203, %202 : vector<8x128xf32>
    %cst_74 = arith.constant 5.000000e-01 : f32
    %205 = vector.broadcast %cst_74 : f32 to vector<8x128xf32>
    %206 = arith.addf %204, %205 : vector<8x128xf32>
    %207 = vector.extract_strided_slice %190 {offsets = [0, 256], sizes = [8, 128], strides = [1, 1]} : vector<8x512xf32> to vector<8x128xf32>
    %208 = math.tanh %207 : vector<8x128xf32>
    %209 = vector.extract_strided_slice %190 {offsets = [0, 384], sizes = [8, 128], strides = [1, 1]} : vector<8x512xf32> to vector<8x128xf32>
    %cst_75 = arith.constant 5.000000e-01 : f32
    %210 = vector.broadcast %cst_75 : f32 to vector<8x128xf32>
    %211 = arith.mulf %210, %209 : vector<8x128xf32>
    %212 = math.tanh %211 : vector<8x128xf32>
    %cst_76 = arith.constant 5.000000e-01 : f32
    %213 = vector.broadcast %cst_76 : f32 to vector<8x128xf32>
    %214 = arith.mulf %213, %212 : vector<8x128xf32>
    %cst_77 = arith.constant 5.000000e-01 : f32
    %215 = vector.broadcast %cst_77 : f32 to vector<8x128xf32>
    %216 = arith.addf %214, %215 : vector<8x128xf32>
    %217 = arith.mulf %206, %183 : vector<8x128xf32>
    %218 = arith.mulf %198, %208 : vector<8x128xf32>
    %219 = arith.addf %217, %218 : vector<8x128xf32>
    %220 = math.tanh %219 : vector<8x128xf32>
    %221 = arith.mulf %216, %220 : vector<8x128xf32>
    %c6_i32 = arith.constant 6 : i32
    %222 = arith.index_cast %c6_i32 : i32 to index
    %c0_78 = arith.constant 0 : index
    %c0_79 = arith.constant 0 : index
    %223 = vector.load %arg2[%222, %c0_78, %c0_79] : memref<8x8x512xf32, #tpu.memory_space<vmem>>, vector<1x8x512xf32>
    %224 = vector.shape_cast %223 : vector<1x8x512xf32> to vector<8x512xf32>
    %cst_80 = arith.constant dense<0.000000e+00> : vector<8x512xf32>
    %225 = tpu.matmul %221, %3, %cst_80 {dimension_numbers = #tpu.dot_dimension_numbers<[1], [0], [0], [1], [0, 0, 1, 1], [], []>} : vector<8x128xf32>, vector<128x512xf32>, vector<8x512xf32> -> vector<8x512xf32>
    %226 = arith.addf %224, %225 : vector<8x512xf32>
    %227 = vector.extract_strided_slice %226 {offsets = [0, 0], sizes = [8, 128], strides = [1, 1]} : vector<8x512xf32> to vector<8x128xf32>
    %cst_81 = arith.constant 5.000000e-01 : f32
    %228 = vector.broadcast %cst_81 : f32 to vector<8x128xf32>
    %229 = arith.mulf %228, %227 : vector<8x128xf32>
    %230 = math.tanh %229 : vector<8x128xf32>
    %cst_82 = arith.constant 5.000000e-01 : f32
    %231 = vector.broadcast %cst_82 : f32 to vector<8x128xf32>
    %232 = arith.mulf %231, %230 : vector<8x128xf32>
    %cst_83 = arith.constant 5.000000e-01 : f32
    %233 = vector.broadcast %cst_83 : f32 to vector<8x128xf32>
    %234 = arith.addf %232, %233 : vector<8x128xf32>
    %235 = vector.extract_strided_slice %226 {offsets = [0, 128], sizes = [8, 128], strides = [1, 1]} : vector<8x512xf32> to vector<8x128xf32>
    %cst_84 = arith.constant 5.000000e-01 : f32
    %236 = vector.broadcast %cst_84 : f32 to vector<8x128xf32>
    %237 = arith.mulf %236, %235 : vector<8x128xf32>
    %238 = math.tanh %237 : vector<8x128xf32>
    %cst_85 = arith.constant 5.000000e-01 : f32
    %239 = vector.broadcast %cst_85 : f32 to vector<8x128xf32>
    %240 = arith.mulf %239, %238 : vector<8x128xf32>
    %cst_86 = arith.constant 5.000000e-01 : f32
    %241 = vector.broadcast %cst_86 : f32 to vector<8x128xf32>
    %242 = arith.addf %240, %241 : vector<8x128xf32>
    %243 = vector.extract_strided_slice %226 {offsets = [0, 256], sizes = [8, 128], strides = [1, 1]} : vector<8x512xf32> to vector<8x128xf32>
    %244 = math.tanh %243 : vector<8x128xf32>
    %245 = vector.extract_strided_slice %226 {offsets = [0, 384], sizes = [8, 128], strides = [1, 1]} : vector<8x512xf32> to vector<8x128xf32>
    %cst_87 = arith.constant 5.000000e-01 : f32
    %246 = vector.broadcast %cst_87 : f32 to vector<8x128xf32>
    %247 = arith.mulf %246, %245 : vector<8x128xf32>
    %248 = math.tanh %247 : vector<8x128xf32>
    %cst_88 = arith.constant 5.000000e-01 : f32
    %249 = vector.broadcast %cst_88 : f32 to vector<8x128xf32>
    %250 = arith.mulf %249, %248 : vector<8x128xf32>
    %cst_89 = arith.constant 5.000000e-01 : f32
    %251 = vector.broadcast %cst_89 : f32 to vector<8x128xf32>
    %252 = arith.addf %250, %251 : vector<8x128xf32>
    %253 = arith.mulf %242, %219 : vector<8x128xf32>
    %254 = arith.mulf %234, %244 : vector<8x128xf32>
    %255 = arith.addf %253, %254 : vector<8x128xf32>
    %256 = math.tanh %255 : vector<8x128xf32>
    %257 = arith.mulf %252, %256 : vector<8x128xf32>
    %c7_i32 = arith.constant 7 : i32
    %258 = arith.index_cast %c7_i32 : i32 to index
    %c0_90 = arith.constant 0 : index
    %c0_91 = arith.constant 0 : index
    %259 = vector.load %arg2[%258, %c0_90, %c0_91] : memref<8x8x512xf32, #tpu.memory_space<vmem>>, vector<1x8x512xf32>
    %260 = vector.shape_cast %259 : vector<1x8x512xf32> to vector<8x512xf32>
    %cst_92 = arith.constant dense<0.000000e+00> : vector<8x512xf32>
    %261 = tpu.matmul %257, %3, %cst_92 {dimension_numbers = #tpu.dot_dimension_numbers<[1], [0], [0], [1], [0, 0, 1, 1], [], []>} : vector<8x128xf32>, vector<128x512xf32>, vector<8x512xf32> -> vector<8x512xf32>
    %262 = arith.addf %260, %261 : vector<8x512xf32>
    %263 = vector.extract_strided_slice %262 {offsets = [0, 0], sizes = [8, 128], strides = [1, 1]} : vector<8x512xf32> to vector<8x128xf32>
    %cst_93 = arith.constant 5.000000e-01 : f32
    %264 = vector.broadcast %cst_93 : f32 to vector<8x128xf32>
    %265 = arith.mulf %264, %263 : vector<8x128xf32>
    %266 = math.tanh %265 : vector<8x128xf32>
    %cst_94 = arith.constant 5.000000e-01 : f32
    %267 = vector.broadcast %cst_94 : f32 to vector<8x128xf32>
    %268 = arith.mulf %267, %266 : vector<8x128xf32>
    %cst_95 = arith.constant 5.000000e-01 : f32
    %269 = vector.broadcast %cst_95 : f32 to vector<8x128xf32>
    %270 = arith.addf %268, %269 : vector<8x128xf32>
    %271 = vector.extract_strided_slice %262 {offsets = [0, 128], sizes = [8, 128], strides = [1, 1]} : vector<8x512xf32> to vector<8x128xf32>
    %cst_96 = arith.constant 5.000000e-01 : f32
    %272 = vector.broadcast %cst_96 : f32 to vector<8x128xf32>
    %273 = arith.mulf %272, %271 : vector<8x128xf32>
    %274 = math.tanh %273 : vector<8x128xf32>
    %cst_97 = arith.constant 5.000000e-01 : f32
    %275 = vector.broadcast %cst_97 : f32 to vector<8x128xf32>
    %276 = arith.mulf %275, %274 : vector<8x128xf32>
    %cst_98 = arith.constant 5.000000e-01 : f32
    %277 = vector.broadcast %cst_98 : f32 to vector<8x128xf32>
    %278 = arith.addf %276, %277 : vector<8x128xf32>
    %279 = vector.extract_strided_slice %262 {offsets = [0, 256], sizes = [8, 128], strides = [1, 1]} : vector<8x512xf32> to vector<8x128xf32>
    %280 = math.tanh %279 : vector<8x128xf32>
    %281 = vector.extract_strided_slice %262 {offsets = [0, 384], sizes = [8, 128], strides = [1, 1]} : vector<8x512xf32> to vector<8x128xf32>
    %cst_99 = arith.constant 5.000000e-01 : f32
    %282 = vector.broadcast %cst_99 : f32 to vector<8x128xf32>
    %283 = arith.mulf %282, %281 : vector<8x128xf32>
    %284 = math.tanh %283 : vector<8x128xf32>
    %cst_100 = arith.constant 5.000000e-01 : f32
    %285 = vector.broadcast %cst_100 : f32 to vector<8x128xf32>
    %286 = arith.mulf %285, %284 : vector<8x128xf32>
    %cst_101 = arith.constant 5.000000e-01 : f32
    %287 = vector.broadcast %cst_101 : f32 to vector<8x128xf32>
    %288 = arith.addf %286, %287 : vector<8x128xf32>
    %289 = arith.mulf %278, %255 : vector<8x128xf32>
    %290 = arith.mulf %270, %280 : vector<8x128xf32>
    %291 = arith.addf %289, %290 : vector<8x128xf32>
    %292 = math.tanh %291 : vector<8x128xf32>
    %293 = arith.mulf %288, %292 : vector<8x128xf32>
    %c8_i32 = arith.constant 8 : i32
    %c0_i32_102 = arith.constant 0 : i32
    %294 = arith.cmpi slt, %arg1, %c0_i32_102 : i32
    %295 = arith.extui %294 : i1 to i32
    %c0_i32_103 = arith.constant 0 : i32
    %296 = arith.cmpi ne, %295, %c0_i32_103 : i32
    scf.if %296 {
      %c0_106 = arith.constant 0 : index
      %c0_107 = arith.constant 0 : index
      %300 = vector.load %arg5[%c0_106, %c0_107] : memref<8x128xf32, #tpu.memory_space<vmem>>, vector<8x128xf32>
      tpu.vector_store %arg5[%c0_106, %c0_107], %293 {strides = array<i32>} : memref<8x128xf32, #tpu.memory_space<vmem>>, vector<8x128xf32>,
      %c0_108 = arith.constant 0 : index
      %c0_109 = arith.constant 0 : index
      %301 = vector.load %arg6[%c0_108, %c0_109] : memref<8x128xf32, #tpu.memory_space<vmem>>, vector<8x128xf32>
      tpu.vector_store %arg6[%c0_108, %c0_109], %291 {strides = array<i32>} : memref<8x128xf32, #tpu.memory_space<vmem>>, vector<8x128xf32>,
    } else {
    }
    %c0_i32_104 = arith.constant 0 : i32
    %297 = arith.cmpi eq, %arg1, %c0_i32_104 : i32
    %298 = arith.extui %297 : i1 to i32
    %c0_i32_105 = arith.constant 0 : i32
    %299 = arith.cmpi ne, %298, %c0_i32_105 : i32
    scf.if %299 {
      %c0_106 = arith.constant 0 : index
      %c0_107 = arith.constant 0 : index
      %300 = vector.load %arg4[%c0_106, %c0_107] : memref<8x128xf32, #tpu.memory_space<vmem>>, vector<8x128xf32>
      tpu.vector_store %arg4[%c0_106, %c0_107], %293 {strides = array<i32>} : memref<8x128xf32, #tpu.memory_space<vmem>>, vector<8x128xf32>,
    } else {
    }
    return
  }
  func.func @transform_0(%arg0: i32, %arg1: i32) -> (i32, i32, i32) {
    %c0_i32 = arith.constant 0 : i32
    %c0_i32_0 = arith.constant 0 : i32
    return %arg1, %arg0, %c0_i32 : i32, i32, i32
  }
  func.func @transform_1(%arg0: i32, %arg1: i32) -> (i32, i32) {
    %c0_i32 = arith.constant 0 : i32
    %c0_i32_0 = arith.constant 0 : i32
    %c0_i32_1 = arith.constant 0 : i32
    return %c0_i32, %c0_i32_0 : i32, i32
  }
  func.func @transform_2(%arg0: i32, %arg1: i32) -> (i32, i32) {
    %c0_i32 = arith.constant 0 : i32
    %c0_i32_0 = arith.constant 0 : i32
    return %arg0, %c0_i32 : i32, i32
  }
}

</mosaic_0001>

<bundles_post_ra>
// kernel: tpu_custom_call.1
= control target key start
LH: loop header
LB: loop body
LE: loop exit
PB: predicated region body
PF: predicated region fallthrough
CT: control target
= control target key end

     0   :  { %7 = vsyncpa [#allocation5], 0  ;;  %s2578_s0 = inlined_call_operand.hbm [shape: f32[8,8,512], index: 0, kind: input, shape index: {}]   ;;  %s2579_s1 = inlined_call_operand.hbm [shape: f32[128,512], index: 1, kind: input, shape index: {}]   ;;  %s2580_s2 = inlined_call_operand.hbm [shape: f32[8,128], index: 2, kind: output, shape index: {}]  }
   0x1   :  { %8 = vsyncpa [#allocation8], 0 }
   0x2   :  { %9 = vsyncpa [#allocation6], 0  ;;  %s2159_s9 = smov [#allocation4]   ;;  %s2087_s13 = scalar_lea.hbm %s2578_s0, 4096 }
   0x3   :  { %s15_s10 = sshll.u32 %s2159_s9, 4  ;;  %p2088_p0 = scmp.ne.s32.totalorder %s2578_s0, %s2087_s13  ;;  %s16_s10 = int_to_ptr.vmem [resolvable:$true] %s15_s10 }
   0x4   :  { %p2091_p1 = scmp.lt.u32.totalorder %s2087_s13, %s2578_s0 }
   0x6   :  { %p2093_p2 = pnand %p2091_p1, %p2088_p0 }
   0x8   :  { %2096 = shalt.err (!%p2093_p2)
}
   0x9   :  { %s2097_s18 = scalar_lea.vmem %s16_s10, 4096  ;;  %p2102_p4 = scmp.lt.s32.totalorder %s16_s10, %s16_s10 }
   0xa   :  { %p2098_p3 = scmp.ne.s32.totalorder %s16_s10, %s2097_s18  ;;  %p2103_p5 = scmp.lt.s32.totalorder %s2097_s18, %s2097_s18 }
   0xc   :  { %p2104_p6 = por %p2103_p5, %p2102_p4 }
   0xe   :  { %p2105_p7 = pnand %p2104_p6, %p2098_p3 }
  0x10   :  { %2108 = shalt.err (!%p2105_p7)
}
  0x11   :  { %s2160_s19 = smov 512   ;;  %s2161_s20 = smov 32  }
  0x12   :  { %21 = dma.hbm_to_vmem [thread:$0]  %s2578_s0, 4096, %s16_s10, [#allocation5], %s2160_s19, %s2160_s19, %s2161_s20  }
  0x13   :  { %s2162_s23 = smov [#allocation7]   ;;  %s2109_s27 = scalar_lea.hbm %s2579_s1, 8192 }
  0x14   :  { %s27_s24 = sshll.u32 %s2162_s23, 4  ;;  %p2110_p8 = scmp.ne.s32.totalorder %s2579_s1, %s2109_s27  ;;  %s28_s24 = int_to_ptr.vmem [resolvable:$true] %s27_s24 }
  0x15   :  { %p2113_p9 = scmp.lt.u32.totalorder %s2109_s27, %s2579_s1 }
  0x17   :  { %p2115_p10 = pnand %p2113_p9, %p2110_p8 }
  0x19   :  { %2118 = shalt.err (!%p2115_p10)
}
  0x1a   :  { %s2119_s4 = scalar_lea.vmem %s28_s24, 8192  ;;  %p2124_p12 = scmp.lt.s32.totalorder %s28_s24, %s28_s24 }
  0x1b   :  { %p2120_p11 = scmp.ne.s32.totalorder %s28_s24, %s2119_s4  ;;  %p2125_p13 = scmp.lt.s32.totalorder %s2119_s4, %s2119_s4 }
  0x1d   :  { %p2126_p0 = por %p2125_p13, %p2124_p12 }
  0x1f   :  { %p2127_p1 = pnand %p2126_p0, %p2120_p11 }
  0x21   :  { %2130 = shalt.err (!%p2127_p1)
}
  0x22   :  { %33 = dma.hbm_to_vmem [thread:$0]  %s2579_s1, 8192, %s28_s24, [#allocation8], %s2160_s19, %s2160_s19, %s2161_s20  }
  0x23   :  { %2153 = dma.done.wait [#allocation5], 4096  }
  0x24   :  { %2154 = vsyncadd [#allocation5], 4294963200 }
  0x25   :  { %2155 = dma.done.wait [#allocation8], 8192  }
  0x26   :  { %2156 = vsyncadd [#allocation8], 4294959104  ;;  %v2163_v0 = vmov 0.0   ;;  %v47_v1 = vld [vmem:[#allocation7 + $0x8] sm:$0xff]  ;;  %v46_v3 = vld [vmem:[#allocation7] sm:$0xff]  ;;  %s2164_s1 = smov [#allocation9]  }
  0x27   :  { %180 = vmatprep.mubr.f32.mxu0 %v2163_v0  ;;  %251 = vmatprep.mubr.f32.mxu1 %v2163_v0  ;;  %v51_v2 = vld [vmem:[#allocation7 + $0x28] sm:$0xff]  ;;  %v50_v5 = vld [vmem:[#allocation7 + $0x20] sm:$0xff]  ;;  %v49_v12 = vld [vmem:[#allocation7 + $0x18] sm:$0xff]  ;;  %s1479_s6 = sshll.u32 %s2164_s1, 4  ;;  %s1480_s6 = int_to_ptr.vmem [resolvable:$true] %s1479_s6 }
  0x28   :  { %v2206_v4 = vpack.c.bf16 %v51_v2, %v47_v1  ;;  %v55_v6 = vld [vmem:[#allocation7 + $0x48] sm:$0xff]  ;;  %v2208_v8 = vpack.c.bf16 %v50_v5, %v46_v3  ;;  %v54_v10 = vld [vmem:[#allocation7 + $0x40] sm:$0xff]  ;;  %v53_v13 = vld [vmem:[#allocation7 + $0x38] sm:$0xff]  ;;  %s2131_s7 = scalar_lea.vmem %s1480_s6, 128  ;;  %p2136_p3 = scmp.lt.s32.totalorder %s1480_s6, %s1480_s6 }
  0x29   :  { %v59_v7 = vld [vmem:[#allocation7 + $0x68] sm:$0xff]  ;;  %v58_v11 = vld [vmem:[#allocation7 + $0x60] sm:$0xff]  ;;  %v48_v14 = vld [vmem:[#allocation7 + $0x10] sm:$0xff]  ;;  %v2216_v17 = vpack.c.bf16 %v53_v13, %v49_v12  ;;  %p2132_p2 = scmp.ne.s32.totalorder %s1480_s6, %s2131_s7  ;;  %p2137_p4 = scmp.lt.s32.totalorder %s2131_s7, %s2131_s7 }
  0x2a   :  { %v2210_v9 = vpack.c.bf16 %v59_v7, %v55_v6  ;;  %1490 = vmatprep.subr.bf16.mxu0 %v2206_v4  ;;  %v52_v15 = vld [vmem:[#allocation7 + $0x30] sm:$0xff]  ;;  %v2214_v16 = vpack.c.bf16 %v58_v11, %v54_v10  ;;  %v63_v19 = vld [vmem:[#allocation7 + $0x88] sm:$0xff]  ;;  %v62_v21 = vld [vmem:[#allocation7 + $0x80] sm:$0xff] }
  0x2b   :  { %1492 = vmatpush1.bf16.msra.mxu0 %v2208_v8  ;;  %v2218_v18 = vpack.c.bf16 %v52_v15, %v48_v14  ;;  %v67_v20 = vld [vmem:[#allocation7 + $0xa8] sm:$0xff]  ;;  %v66_v23 = vld [vmem:[#allocation7 + $0xa0] sm:$0xff]  ;;  %v57_v24 = vld [vmem:[#allocation7 + $0x58] sm:$0xff]  ;;  %1522 = vmatprep.subr.bf16.mxu1 %v2216_v17  ;;  %p2138_p5 = por %p2137_p4, %p2136_p3 }
  0x2c   :  { %1494 = vmatprep.subr.bf16.mxu0 %v2210_v9  ;;  %v2221_v22 = vpack.c.bf16 %v67_v20, %v63_v19  ;;  %v61_v25 = vld [vmem:[#allocation7 + $0x78] sm:$0xff]  ;;  %v56_v27 = vld [vmem:[#allocation7 + $0x50] sm:$0xff]  ;;  %v71_v29 = vld [vmem:[#allocation7 + $0xc8] sm:$0xff]  ;;  %v2230_v32 = vpack.c.bf16 %v66_v23, %v62_v21 }
  0x2d   :  { %v2224_v26 = vpack.c.bf16 %v61_v25, %v57_v24  ;;  %v60_v28 = vld [vmem:[#allocation7 + $0x70] sm:$0xff]  ;;  %1524 = vmatpush1.bf16.msra.mxu1 %v2218_v18  ;;  %v75_v31 = vld [vmem:[#allocation7 + $0xe8] sm:$0xff]  ;;  %v65_v33 = vld [vmem:[#allocation7 + $0x98] sm:$0xff]  ;;  %p2139_p6 = pnand %p2138_p5, %p2132_p2 }
  0x2e   :  { %v2227_v30 = vpack.c.bf16 %v60_v28, %v56_v27  ;;  %v69_v34 = vld [vmem:[#allocation7 + $0xb8] sm:$0xff]  ;;  %v64_v35 = vld [vmem:[#allocation7 + $0x90] sm:$0xff]  ;;  %v2234_v36 = vpack.c.bf16 %v75_v31, %v71_v29  ;;  %v70_v37 = vld [vmem:[#allocation7 + $0xc0] sm:$0xff] }
  0x2f   :  { %1496 = vmatpush1.bf16.msra.mxu0 %v2214_v16  ;;  %1526 = vmatprep.subr.bf16.mxu1 %v2224_v26  ;;  %v74_v38 = vld [vmem:[#allocation7 + $0xe0] sm:$0xff]  ;;  %v2236_v39 = vpack.c.bf16 %v69_v34, %v65_v33  ;;  %v68_v40 = vld [vmem:[#allocation7 + $0xb0] sm:$0xff]  ;;  %v79_v41 = vld [vmem:[#allocation7 + $0x108] sm:$0xff] }
  0x30   :  { %1498 = vmatprep.subr.bf16.mxu0 %v2221_v22  ;;  %v83_v42 = vld [vmem:[#allocation7 + $0x128] sm:$0xff]  ;;  %v73_v43 = vld [vmem:[#allocation7 + $0xd8] sm:$0xff]  ;;  %v2239_v44 = vpack.c.bf16 %v68_v40, %v64_v35  ;;  %v2242_v46 = vpack.c.bf16 %v74_v38, %v70_v37  ;;  %v78_v47 = vld [vmem:[#allocation7 + $0x100] sm:$0xff] }
  0x31   :  { %1528 = vmatpush1.bf16.msra.mxu1 %v2227_v30  ;;  %v77_v45 = vld [vmem:[#allocation7 + $0xf8] sm:$0xff]  ;;  %v72_v49 = vld [vmem:[#allocation7 + $0xd0] sm:$0xff]  ;;  %v2248_v51 = vpack.c.bf16 %v83_v42, %v79_v41  ;;  %v82_v52 = vld [vmem:[#allocation7 + $0x120] sm:$0xff] }
  0x32   :  { %1530 = vmatprep.subr.bf16.mxu1 %v2236_v39  ;;  %v2245_v48 = vpack.c.bf16 %v77_v45, %v73_v43  ;;  %v76_v50 = vld [vmem:[#allocation7 + $0xf0] sm:$0xff]  ;;  %v81_v53 = vld [vmem:[#allocation7 + $0x118] sm:$0xff]  ;;  %v87_v55 = vld [vmem:[#allocation7 + $0x148] sm:$0xff]  ;;  %v2254_v58 = vpack.c.bf16 %v82_v52, %v78_v47 }
  0x33   :  { %1500 = vmatpush1.bf16.msra.mxu0 %v2230_v32  ;;  %v85_v54 = vld [vmem:[#allocation7 + $0x138] sm:$0xff]  ;;  %v91_v56 = vld [vmem:[#allocation7 + $0x168] sm:$0xff]  ;;  %v2251_v57 = vpack.c.bf16 %v76_v50, %v72_v49  ;;  %v86_v59 = vld [vmem:[#allocation7 + $0x140] sm:$0xff] }
  0x34   :  { %1502 = vmatprep.subr.bf16.mxu0 %v2234_v36  ;;  %v2257_v60 = vpack.c.bf16 %v85_v54, %v81_v53  ;;  %v80_v61 = vld [vmem:[#allocation7 + $0x110] sm:$0xff]  ;;  %v2260_v63 = vpack.c.bf16 %v91_v56, %v87_v55  ;;  %v90_v1 = vld [vmem:[#allocation7 + $0x160] sm:$0xff]  ;;  %v89_v2 = vld [vmem:[#allocation7 + $0x158] sm:$0xff] }
  0x35   :  { %1532 = vmatpush1.bf16.msra.mxu1 %v2239_v44  ;;  %v84_v62 = vld [vmem:[#allocation7 + $0x130] sm:$0xff]  ;;  %v93_v3 = vld [vmem:[#allocation7 + $0x178] sm:$0xff]  ;;  %v95_v5 = vld [vmem:[#allocation7 + $0x188] sm:$0xff]  ;;  %v2266_v10 = vpack.c.bf16 %v90_v1, %v86_v59 }
  0x36   :  { %1534 = vmatprep.subr.bf16.mxu1 %v2245_v48  ;;  %v99_v6 = vld [vmem:[#allocation7 + $0x1a8] sm:$0xff]  ;;  %v2263_v7 = vpack.c.bf16 %v84_v62, %v80_v61  ;;  %v94_v11 = vld [vmem:[#allocation7 + $0x180] sm:$0xff]  ;;  %v2269_v12 = vpack.c.bf16 %v93_v3, %v89_v2  ;;  %v88_v13 = vld [vmem:[#allocation7 + $0x150] sm:$0xff] }
  0x37   :  { %1504 = vmatpush1.bf16.msra.mxu0 %v2242_v46  ;;  %v92_v14 = vld [vmem:[#allocation7 + $0x170] sm:$0xff]  ;;  %v2272_v15 = vpack.c.bf16 %v99_v6, %v95_v5  ;;  %v98_v19 = vld [vmem:[#allocation7 + $0x1a0] sm:$0xff]  ;;  %v97_v20 = vld [vmem:[#allocation7 + $0x198] sm:$0xff] }
  0x38   :  { %1506 = vmatprep.subr.bf16.mxu0 %v2248_v51  ;;  %v101_v21 = vld [vmem:[#allocation7 + $0x1b8] sm:$0xff]  ;;  %v103_v23 = vld [vmem:[#allocation7 + $0x1c8] sm:$0xff]  ;;  %v2275_v25 = vpack.c.bf16 %v92_v14, %v88_v13  ;;  %v2278_v27 = vpack.c.bf16 %v98_v19, %v94_v11  ;;  %v102_v28 = vld [vmem:[#allocation7 + $0x1c0] sm:$0xff] }
  0x39   :  { %1536 = vmatpush1.bf16.msra.mxu1 %v2251_v57  ;;  %v107_v24 = vld [vmem:[#allocation7 + $0x1e8] sm:$0xff]  ;;  %v2281_v29 = vpack.c.bf16 %v101_v21, %v97_v20  ;;  %v96_v31 = vld [vmem:[#allocation7 + $0x190] sm:$0xff]  ;;  %v106_v35 = vld [vmem:[#allocation7 + $0x1e0] sm:$0xff] }
  0x3a   :  { %1538 = vmatprep.subr.bf16.mxu1 %v2257_v60  ;;  %v100_v33 = vld [vmem:[#allocation7 + $0x1b0] sm:$0xff]  ;;  %v2284_v34 = vpack.c.bf16 %v107_v24, %v103_v23  ;;  %v105_v37 = vld [vmem:[#allocation7 + $0x1d8] sm:$0xff]  ;;  %v2290_v41 = vpack.c.bf16 %v106_v35, %v102_v28  ;;  %v112_v49 = vld [vmem:[#allocation4] sm:$0xff] }
  0x3b   :  { %1508 = vmatpush1.bf16.msra.mxu0 %v2254_v58  ;;  %v109_v38 = vld [vmem:[#allocation7 + $0x1f8] sm:$0xff]  ;;  %v2287_v40 = vpack.c.bf16 %v100_v33, %v96_v31  ;;  %v104_v43 = vld [vmem:[#allocation7 + $0x1d0] sm:$0xff]  ;;  %v113_v50 = vld [vmem:[#allocation4 + $0x8] sm:$0xff] }
  0x3c   :  { %1510 = vmatprep.subr.bf16.mxu0 %v2260_v63  ;;  %v2293_v42 = vpack.c.bf16 %v109_v38, %v105_v37  ;;  %v108_v45 = vld [vmem:[#allocation7 + $0x1f0] sm:$0xff]  ;;  %v115_v3 = vld [vmem:[#allocation4 + $0x18] sm:$0xff] }
  0x3d   :  { %1540 = vmatpush1.bf16.msra.mxu1 %v2263_v7  ;;  %v2297_v47 = vpack.c.bf16 %v108_v45, %v104_v43  ;;  %v114_v55 = vld [vmem:[#allocation4 + $0x10] sm:$0xff]  ;;  %v281_v45 = vld [vmem:[#allocation4 + $0x20] sm:$0xff] }
  0x3e   :  { %1542 = vmatprep.subr.bf16.mxu1 %v2269_v12 }
  0x3f   :  { %1512 = vmatpush1.bf16.msra.mxu0 %v2266_v10 }
  0x40   :  { %1514 = vmatprep.subr.bf16.mxu0 %v2272_v15 }
  0x41   :  { %1544 = vmatpush1.bf16.msra.mxu1 %v2275_v25 }
  0x42   :  { %1546 = vmatprep.subr.bf16.mxu1 %v2281_v29 }
  0x43   :  { %1516 = vmatpush1.bf16.msra.mxu0 %v2278_v27 }
  0x44   :  { %1518 = vmatprep.subr.bf16.mxu0 %v2284_v34 }
  0x45   :  { %1548 = vmatpush1.bf16.msra.mxu1 %v2287_v40 }
  0x46   :  { %1550 = vmatprep.subr.bf16.mxu1 %v2293_v42 }
  0x47   :  { %1520 = vmatpush1.bf16.msra.mxu0 %v2290_v41 }
  0x48   :  { %1554 = vmatprep.subr.bf16.mxu0 %v2206_v4 }
  0x49   :  { %1552 = vmatpush1.bf16.msra.mxu1 %v2297_v47 }
  0x4a   :  { %181 = vmatmul.mubr.f32.vlgmr.msra.gmra.mrb[0].mxu0 %v2163_v0  ;;  %1586 = vmatprep.subr.bf16.mxu1 %v2216_v17 }
  0x4b   :  { %1556 = vmatpush1.bf16.msra.mxu0 %v2208_v8  ;;  %349 = vmatprep.mubr.f32.mxu0 %v2163_v0 }
  0x4c   :  { %1558 = vmatprep.subr.bf16.mxu0 %v2210_v9  ;;  %252 = vmatmul.mubr.f32.vlgmr.msra.gmra.mrb[0].mxu1 %v2163_v0 }
  0x4d   :  { %1588 = vmatpush1.bf16.msra.mxu1 %v2218_v18  ;;  %420 = vmatprep.mubr.f32.mxu1 %v2163_v0 }
  0x4e   :  { %1590 = vmatprep.subr.bf16.mxu1 %v2224_v26 }
  0x4f   :  { %1560 = vmatpush1.bf16.msra.mxu0 %v2214_v16 }
  0x50   :  { %1562 = vmatprep.subr.bf16.mxu0 %v2221_v22 }
  0x51   :  { %1592 = vmatpush1.bf16.msra.mxu1 %v2227_v30 }
  0x52   :  { %1594 = vmatprep.subr.bf16.mxu1 %v2236_v39 }
  0x53   :  { %1564 = vmatpush1.bf16.msra.mxu0 %v2230_v32 }
  0x54   :  { %1566 = vmatprep.subr.bf16.mxu0 %v2234_v36 }
  0x55   :  { %1596 = vmatpush1.bf16.msra.mxu1 %v2239_v44 }
  0x56   :  { %1598 = vmatprep.subr.bf16.mxu1 %v2245_v48 }
  0x57   :  { %1568 = vmatpush1.bf16.msra.mxu0 %v2242_v46 }
  0x58   :  { %1570 = vmatprep.subr.bf16.mxu0 %v2248_v51 }
  0x59   :  { %1600 = vmatpush1.bf16.msra.mxu1 %v2251_v57 }
  0x5a   :  { %1602 = vmatprep.subr.bf16.mxu1 %v2257_v60 }
  0x5b   :  { %1572 = vmatpush1.bf16.msra.mxu0 %v2254_v58 }
  0x5c   :  { %1574 = vmatprep.subr.bf16.mxu0 %v2260_v63 }
  0x5d   :  { %1604 = vmatpush1.bf16.msra.mxu1 %v2263_v7 }
  0x5e   :  { %1606 = vmatprep.subr.bf16.mxu1 %v2269_v12 }
  0x5f   :  { %1576 = vmatpush1.bf16.msra.mxu0 %v2266_v10 }
  0x60   :  { %1578 = vmatprep.subr.bf16.mxu0 %v2272_v15 }
  0x61   :  { %1608 = vmatpush1.bf16.msra.mxu1 %v2275_v25 }
  0x62   :  { %1610 = vmatprep.subr.bf16.mxu1 %v2281_v29 }
  0x63   :  { %1580 = vmatpush1.bf16.msra.mxu0 %v2278_v27 }
  0x64   :  { %1582 = vmatprep.subr.bf16.mxu0 %v2284_v34 }
  0x65   :  { %1612 = vmatpush1.bf16.msra.mxu1 %v2287_v40 }
  0x66   :  { %1614 = vmatprep.subr.bf16.mxu1 %v2293_v42 }
  0x67   :  { %1584 = vmatpush1.bf16.msra.mxu0 %v2290_v41 }
  0x68   :  { %1618 = vmatprep.subr.bf16.mxu0 %v2206_v4 }
  0x69   :  { %1616 = vmatpush1.bf16.msra.mxu1 %v2297_v47 }
  0x6a   :  { %1650 = vmatprep.subr.bf16.mxu1 %v2216_v17 }
 0x11d   :  { %v182_v52 = vpop.f32.mrb[0].mxu0 }
 0x11e   :  { %v258_v53 = vadd.f32 %v182_v52, %v112_v49  ;;  %v184_v54 = vpop.f32.mrb[1].mxu0  ;;  %v282_v49 = vld [vmem:[#allocation4 + $0x28] sm:$0xff] }
 0x11f   :  { %v259_v56 = vadd.f32 %v184_v54, %v113_v50  ;;  %v253_v61 = vpop.f32.mrb[0].mxu1 }
 0x120   :  { %v262_v59 = vmul.f32 0.5, %v258_v53  ;;  %v260_v1 = vadd.f32 %v253_v61, %v114_v55  ;;  %v255_v2 = vpop.f32.mrb[1].mxu1 }
 0x121   :  { %v266_v62 = vmul.f32 0.5, %v259_v56  ;;  %v261_v5 = vadd.f32 %v255_v2, %v115_v3  ;;  %v283_v56 = vld [vmem:[#allocation4 + $0x30] sm:$0xff]  ;;  %v284_v2 = vld [vmem:[#allocation4 + $0x38] sm:$0xff] }
 0x122   :  { %2007 = vtanh.f32 %v262_v59 }
 0x123   :  { %2009 = vtanh.f32 %v266_v62  ;;  %v271_v6 = vmul.f32 0.5, %v261_v5 }
 0x124   :  { %2011 = vtanh.f32 %v260_v1 }
 0x125   :  { %2013 = vtanh.f32 %v271_v6 }
 0x12c   :  { %v2008_v11 = vpop.eup %2007 }
 0x12d   :  { %v2010_v13 = vpop.eup %2009  ;;  %v264_v14 = vmul.f32 0.5, %v2008_v11 }
 0x12e   :  { %v2012_v19 = vpop.eup %2011  ;;  %v268_v20 = vmul.f32 0.5, %v2010_v13 }
 0x12f   :  { %v265_v21 = vadd.f32 0.5, %v264_v14  ;;  %v2014_v33 = vpop.eup %2013 }
 0x130   :  { %v269_v23 = vadd.f32 0.5, %v268_v20  ;;  %v273_v35 = vmul.f32 0.5, %v2014_v33 }
 0x131   :  { %v276_v24 = vmul.f32 %v2012_v19, %v265_v21 }
 0x132   :  { %v275_v28 = vmul.f32 0.0, %v269_v23  ;;  %v274_v37 = vadd.f32 0.5, %v273_v35 }
 0x134   :  { %v2340_v31 = vadd.f32 %v276_v24, %v275_v28 }
 0x136   :  { %2015 = vtanh.f32 %v2340_v31 }
 0x140   :  { %v2016_v38 = vpop.eup %2015 }
 0x141   :  { %v279_v43 = vmul.f32 %v2016_v38, %v274_v37 }
 0x143   :  { %350 = vmatmul.mubr.f32.vlgmr.msra.gmra.mrb[2].mxu0 %v279_v43  ;;  %421 = vmatmul.mubr.f32.vlgmr.msra.gmra.mrb[2].mxu1 %v279_v43 }
 0x144   :  { %1620 = vmatpush1.bf16.msra.mxu0 %v2208_v8  ;;  %1652 = vmatpush1.bf16.msra.mxu1 %v2218_v18 }
 0x145   :  { %1622 = vmatprep.subr.bf16.mxu0 %v2210_v9  ;;  %1654 = vmatprep.subr.bf16.mxu1 %v2224_v26 }
 0x146   :  { %518 = vmatprep.mubr.f32.mxu0 %v2163_v0  ;;  %589 = vmatprep.mubr.f32.mxu1 %v2163_v0 }
 0x148   :  { %1624 = vmatpush1.bf16.msra.mxu0 %v2214_v16  ;;  %1656 = vmatpush1.bf16.msra.mxu1 %v2227_v30 }
 0x149   :  { %1626 = vmatprep.subr.bf16.mxu0 %v2221_v22  ;;  %1658 = vmatprep.subr.bf16.mxu1 %v2236_v39 }
 0x14c   :  { %1628 = vmatpush1.bf16.msra.mxu0 %v2230_v32  ;;  %1660 = vmatpush1.bf16.msra.mxu1 %v2239_v44 }
 0x14d   :  { %1630 = vmatprep.subr.bf16.mxu0 %v2234_v36  ;;  %1662 = vmatprep.subr.bf16.mxu1 %v2245_v48 }
 0x150   :  { %1632 = vmatpush1.bf16.msra.mxu0 %v2242_v46  ;;  %1664 = vmatpush1.bf16.msra.mxu1 %v2251_v57 }
 0x151   :  { %1634 = vmatprep.subr.bf16.mxu0 %v2248_v51  ;;  %1666 = vmatprep.subr.bf16.mxu1 %v2257_v60 }
 0x154   :  { %1636 = vmatpush1.bf16.msra.mxu0 %v2254_v58  ;;  %1668 = vmatpush1.bf16.msra.mxu1 %v2263_v7 }
 0x155   :  { %1638 = vmatprep.subr.bf16.mxu0 %v2260_v63  ;;  %1670 = vmatprep.subr.bf16.mxu1 %v2269_v12 }
 0x158   :  { %1640 = vmatpush1.bf16.msra.mxu0 %v2266_v10  ;;  %1672 = vmatpush1.bf16.msra.mxu1 %v2275_v25 }
 0x159   :  { %1642 = vmatprep.subr.bf16.mxu0 %v2272_v15  ;;  %1674 = vmatprep.subr.bf16.mxu1 %v2281_v29 }
 0x15c   :  { %1644 = vmatpush1.bf16.msra.mxu0 %v2278_v27  ;;  %1676 = vmatpush1.bf16.msra.mxu1 %v2287_v40 }
 0x15d   :  { %1646 = vmatprep.subr.bf16.mxu0 %v2284_v34  ;;  %1678 = vmatprep.subr.bf16.mxu1 %v2293_v42 }
 0x160   :  { %1648 = vmatpush1.bf16.msra.mxu0 %v2290_v41  ;;  %1680 = vmatpush1.bf16.msra.mxu1 %v2297_v47 }
 0x161   :  { %1682 = vmatprep.subr.bf16.mxu0 %v2206_v4  ;;  %1714 = vmatprep.subr.bf16.mxu1 %v2216_v17 }
 0x216   :  { %v351_v50 = vpop.f32.mrb[2].mxu0  ;;  %v422_v52 = vpop.f32.mrb[2].mxu1 }
 0x217   :  { %v427_v53 = vadd.f32 %v351_v50, %v281_v45  ;;  %v353_v54 = vpop.f32.mrb[3].mxu0  ;;  %v424_v55 = vpop.f32.mrb[3].mxu1  ;;  %v429_v1 = vadd.f32 %v422_v52, %v283_v56  ;;  %v451_v45 = vld [vmem:[#allocation4 + $0x48] sm:$0xff] }
 0x218   :  { %v428_v59 = vadd.f32 %v353_v54, %v282_v49  ;;  %v430_v3 = vadd.f32 %v424_v55, %v284_v2  ;;  %v452_v55 = vld [vmem:[#allocation4 + $0x50] sm:$0xff] }
 0x219   :  { %v431_v61 = vmul.f32 0.5, %v427_v53 }
 0x21a   :  { %v435_v62 = vmul.f32 0.5, %v428_v59  ;;  %v440_v5 = vmul.f32 0.5, %v430_v3 }
 0x21b   :  { %2017 = vtanh.f32 %v431_v61 }
 0x21c   :  { %2019 = vtanh.f32 %v435_v62 }
 0x21d   :  { %2021 = vtanh.f32 %v429_v1  ;;  %v453_v1 = vld [vmem:[#allocation4 + $0x58] sm:$0xff] }
 0x21e   :  { %2023 = vtanh.f32 %v440_v5 }
 0x225   :  { %v2018_v6 = vpop.eup %2017 }
 0x226   :  { %v2020_v11 = vpop.eup %2019  ;;  %v433_v13 = vmul.f32 0.5, %v2018_v6 }
 0x227   :  { %v437_v14 = vmul.f32 0.5, %v2020_v11  ;;  %v2022_v20 = vpop.eup %2021 }
 0x228   :  { %v434_v19 = vadd.f32 0.5, %v433_v13  ;;  %v2024_v33 = vpop.eup %2023 }
 0x229   :  { %v438_v21 = vadd.f32 0.5, %v437_v14  ;;  %v442_v35 = vmul.f32 0.5, %v2024_v33 }
 0x22a   :  { %v445_v23 = vmul.f32 %v2022_v20, %v434_v19 }
 0x22b   :  { %v444_v24 = vmul.f32 %v438_v21, %v2340_v31  ;;  %v443_v37 = vadd.f32 0.5, %v442_v35  ;;  %v450_v31 = vld [vmem:[#allocation4 + $0x40] sm:$0xff] }
 0x22d   :  { %v2378_v28 = vadd.f32 %v445_v23, %v444_v24 }
 0x22f   :  { %2025 = vtanh.f32 %v2378_v28 }
 0x239   :  { %v2026_v38 = vpop.eup %2025 }
 0x23a   :  { %v448_v43 = vmul.f32 %v2026_v38, %v443_v37 }
 0x23c   :  { %519 = vmatmul.mubr.f32.vlgmr.msra.gmra.mrb[4].mxu0 %v448_v43  ;;  %590 = vmatmul.mubr.f32.vlgmr.msra.gmra.mrb[4].mxu1 %v448_v43 }
 0x23d   :  { %1684 = vmatpush1.bf16.msra.mxu0 %v2208_v8  ;;  %1716 = vmatpush1.bf16.msra.mxu1 %v2218_v18 }
 0x23e   :  { %1686 = vmatprep.subr.bf16.mxu0 %v2210_v9  ;;  %1718 = vmatprep.subr.bf16.mxu1 %v2224_v26 }
 0x23f   :  { %687 = vmatprep.mubr.f32.mxu0 %v2163_v0  ;;  %758 = vmatprep.mubr.f32.mxu1 %v2163_v0 }
 0x241   :  { %1688 = vmatpush1.bf16.msra.mxu0 %v2214_v16  ;;  %1720 = vmatpush1.bf16.msra.mxu1 %v2227_v30 }
 0x242   :  { %1690 = vmatprep.subr.bf16.mxu0 %v2221_v22  ;;  %1722 = vmatprep.subr.bf16.mxu1 %v2236_v39 }
 0x245   :  { %1692 = vmatpush1.bf16.msra.mxu0 %v2230_v32  ;;  %1724 = vmatpush1.bf16.msra.mxu1 %v2239_v44 }
 0x246   :  { %1694 = vmatprep.subr.bf16.mxu0 %v2234_v36  ;;  %1726 = vmatprep.subr.bf16.mxu1 %v2245_v48 }
 0x249   :  { %1696 = vmatpush1.bf16.msra.mxu0 %v2242_v46  ;;  %1728 = vmatpush1.bf16.msra.mxu1 %v2251_v57 }
 0x24a   :  { %1698 = vmatprep.subr.bf16.mxu0 %v2248_v51  ;;  %1730 = vmatprep.subr.bf16.mxu1 %v2257_v60 }
 0x24d   :  { %1700 = vmatpush1.bf16.msra.mxu0 %v2254_v58  ;;  %1732 = vmatpush1.bf16.msra.mxu1 %v2263_v7 }
 0x24e   :  { %1702 = vmatprep.subr.bf16.mxu0 %v2260_v63  ;;  %1734 = vmatprep.subr.bf16.mxu1 %v2269_v12 }
 0x251   :  { %1704 = vmatpush1.bf16.msra.mxu0 %v2266_v10  ;;  %1736 = vmatpush1.bf16.msra.mxu1 %v2275_v25 }
 0x252   :  { %1706 = vmatprep.subr.bf16.mxu0 %v2272_v15  ;;  %1738 = vmatprep.subr.bf16.mxu1 %v2281_v29 }
 0x255   :  { %1708 = vmatpush1.bf16.msra.mxu0 %v2278_v27  ;;  %1740 = vmatpush1.bf16.msra.mxu1 %v2287_v40 }
 0x256   :  { %1710 = vmatprep.subr.bf16.mxu0 %v2284_v34  ;;  %1742 = vmatprep.subr.bf16.mxu1 %v2293_v42 }
 0x259   :  { %1712 = vmatpush1.bf16.msra.mxu0 %v2290_v41  ;;  %1744 = vmatpush1.bf16.msra.mxu1 %v2297_v47 }
 0x25a   :  { %1746 = vmatprep.subr.bf16.mxu0 %v2206_v4  ;;  %1778 = vmatprep.subr.bf16.mxu1 %v2216_v17 }
 0x30f   :  { %v520_v49 = vpop.f32.mrb[4].mxu0  ;;  %v591_v50 = vpop.f32.mrb[4].mxu1 }
 0x310   :  { %v596_v52 = vadd.f32 %v520_v49, %v450_v31  ;;  %v522_v53 = vpop.f32.mrb[5].mxu0  ;;  %v593_v54 = vpop.f32.mrb[5].mxu1  ;;  %v598_v62 = vadd.f32 %v591_v50, %v452_v55  ;;  %v620_v31 = vld [vmem:[#allocation4 + $0x68] sm:$0xff] }
 0x311   :  { %v597_v56 = vadd.f32 %v522_v53, %v451_v45  ;;  %v599_v2 = vadd.f32 %v593_v54, %v453_v1  ;;  %v621_v54 = vld [vmem:[#allocation4 + $0x70] sm:$0xff] }
 0x312   :  { %v600_v59 = vmul.f32 0.5, %v596_v52 }
 0x313   :  { %v604_v61 = vmul.f32 0.5, %v597_v56  ;;  %v609_v3 = vmul.f32 0.5, %v599_v2 }
 0x314   :  { %2027 = vtanh.f32 %v600_v59 }
 0x315   :  { %2029 = vtanh.f32 %v604_v61 }
 0x316   :  { %2031 = vtanh.f32 %v598_v62  ;;  %v622_v62 = vld [vmem:[#allocation4 + $0x78] sm:$0xff] }
 0x317   :  { %2033 = vtanh.f32 %v609_v3 }
 0x31e   :  { %v2028_v5 = vpop.eup %2027 }
 0x31f   :  { %v2030_v6 = vpop.eup %2029  ;;  %v602_v11 = vmul.f32 0.5, %v2028_v5 }
 0x320   :  { %v606_v13 = vmul.f32 0.5, %v2030_v6  ;;  %v2032_v19 = vpop.eup %2031 }
 0x321   :  { %v603_v14 = vadd.f32 0.5, %v602_v11  ;;  %v2034_v33 = vpop.eup %2033 }
 0x322   :  { %v607_v20 = vadd.f32 0.5, %v606_v13  ;;  %v611_v35 = vmul.f32 0.5, %v2034_v33 }
 0x323   :  { %v614_v21 = vmul.f32 %v2032_v19, %v603_v14 }
 0x324   :  { %v613_v23 = vmul.f32 %v607_v20, %v2378_v28  ;;  %v612_v37 = vadd.f32 0.5, %v611_v35  ;;  %v619_v28 = vld [vmem:[#allocation4 + $0x60] sm:$0xff] }
 0x326   :  { %v2416_v24 = vadd.f32 %v614_v21, %v613_v23 }
 0x328   :  { %2035 = vtanh.f32 %v2416_v24 }
 0x332   :  { %v2036_v38 = vpop.eup %2035 }
 0x333   :  { %v617_v43 = vmul.f32 %v2036_v38, %v612_v37 }
 0x335   :  { %688 = vmatmul.mubr.f32.vlgmr.msra.gmra.mrb[6].mxu0 %v617_v43  ;;  %759 = vmatmul.mubr.f32.vlgmr.msra.gmra.mrb[6].mxu1 %v617_v43 }
 0x336   :  { %1748 = vmatpush1.bf16.msra.mxu0 %v2208_v8  ;;  %1780 = vmatpush1.bf16.msra.mxu1 %v2218_v18 }
 0x337   :  { %1750 = vmatprep.subr.bf16.mxu0 %v2210_v9  ;;  %1782 = vmatprep.subr.bf16.mxu1 %v2224_v26 }
 0x338   :  { %856 = vmatprep.mubr.f32.mxu0 %v2163_v0  ;;  %927 = vmatprep.mubr.f32.mxu1 %v2163_v0 }
 0x33a   :  { %1752 = vmatpush1.bf16.msra.mxu0 %v2214_v16  ;;  %1784 = vmatpush1.bf16.msra.mxu1 %v2227_v30 }
 0x33b   :  { %1754 = vmatprep.subr.bf16.mxu0 %v2221_v22  ;;  %1786 = vmatprep.subr.bf16.mxu1 %v2236_v39 }
 0x33e   :  { %1756 = vmatpush1.bf16.msra.mxu0 %v2230_v32  ;;  %1788 = vmatpush1.bf16.msra.mxu1 %v2239_v44 }
 0x33f   :  { %1758 = vmatprep.subr.bf16.mxu0 %v2234_v36  ;;  %1790 = vmatprep.subr.bf16.mxu1 %v2245_v48 }
 0x342   :  { %1760 = vmatpush1.bf16.msra.mxu0 %v2242_v46  ;;  %1792 = vmatpush1.bf16.msra.mxu1 %v2251_v57 }
 0x343   :  { %1762 = vmatprep.subr.bf16.mxu0 %v2248_v51  ;;  %1794 = vmatprep.subr.bf16.mxu1 %v2257_v60 }
 0x346   :  { %1764 = vmatpush1.bf16.msra.mxu0 %v2254_v58  ;;  %1796 = vmatpush1.bf16.msra.mxu1 %v2263_v7 }
 0x347   :  { %1766 = vmatprep.subr.bf16.mxu0 %v2260_v63  ;;  %1798 = vmatprep.subr.bf16.mxu1 %v2269_v12 }
 0x34a   :  { %1768 = vmatpush1.bf16.msra.mxu0 %v2266_v10  ;;  %1800 = vmatpush1.bf16.msra.mxu1 %v2275_v25 }
 0x34b   :  { %1770 = vmatprep.subr.bf16.mxu0 %v2272_v15  ;;  %1802 = vmatprep.subr.bf16.mxu1 %v2281_v29 }
 0x34e   :  { %1772 = vmatpush1.bf16.msra.mxu0 %v2278_v27  ;;  %1804 = vmatpush1.bf16.msra.mxu1 %v2287_v40 }
 0x34f   :  { %1774 = vmatprep.subr.bf16.mxu0 %v2284_v34  ;;  %1806 = vmatprep.subr.bf16.mxu1 %v2293_v42 }
 0x352   :  { %1776 = vmatpush1.bf16.msra.mxu0 %v2290_v41  ;;  %1808 = vmatpush1.bf16.msra.mxu1 %v2297_v47 }
 0x353   :  { %1810 = vmatprep.subr.bf16.mxu0 %v2206_v4  ;;  %1842 = vmatprep.subr.bf16.mxu1 %v2216_v17 }
 0x408   :  { %v689_v45 = vpop.f32.mrb[6].mxu0  ;;  %v760_v49 = vpop.f32.mrb[6].mxu1 }
 0x409   :  { %v765_v50 = vadd.f32 %v689_v45, %v619_v28  ;;  %v691_v52 = vpop.f32.mrb[7].mxu0  ;;  %v762_v53 = vpop.f32.mrb[7].mxu1  ;;  %v767_v61 = vadd.f32 %v760_v49, %v621_v54  ;;  %v789_v28 = vld [vmem:[#allocation4 + $0x88] sm:$0xff] }
 0x40a   :  { %v766_v55 = vadd.f32 %v691_v52, %v620_v31  ;;  %v768_v1 = vadd.f32 %v762_v53, %v622_v62  ;;  %v790_v53 = vld [vmem:[#allocation4 + $0x90] sm:$0xff] }
 0x40b   :  { %v769_v56 = vmul.f32 0.5, %v765_v50 }
 0x40c   :  { %v773_v59 = vmul.f32 0.5, %v766_v55  ;;  %v778_v2 = vmul.f32 0.5, %v768_v1 }
 0x40d   :  { %2037 = vtanh.f32 %v769_v56 }
 0x40e   :  { %2039 = vtanh.f32 %v773_v59 }
 0x40f   :  { %2041 = vtanh.f32 %v767_v61  ;;  %v791_v61 = vld [vmem:[#allocation4 + $0x98] sm:$0xff] }
 0x410   :  { %2043 = vtanh.f32 %v778_v2 }
 0x417   :  { %v2038_v3 = vpop.eup %2037 }
 0x418   :  { %v2040_v5 = vpop.eup %2039  ;;  %v771_v6 = vmul.f32 0.5, %v2038_v3 }
 0x419   :  { %v775_v11 = vmul.f32 0.5, %v2040_v5  ;;  %v2042_v14 = vpop.eup %2041 }
 0x41a   :  { %v772_v13 = vadd.f32 0.5, %v771_v6  ;;  %v2044_v33 = vpop.eup %2043 }
 0x41b   :  { %v776_v19 = vadd.f32 0.5, %v775_v11  ;;  %v780_v35 = vmul.f32 0.5, %v2044_v33 }
 0x41c   :  { %v783_v20 = vmul.f32 %v2042_v14, %v772_v13 }
 0x41d   :  { %v782_v21 = vmul.f32 %v776_v19, %v2416_v24  ;;  %v781_v37 = vadd.f32 0.5, %v780_v35  ;;  %v788_v24 = vld [vmem:[#allocation4 + $0x80] sm:$0xff] }
 0x41f   :  { %v2454_v23 = vadd.f32 %v783_v20, %v782_v21 }
 0x421   :  { %2045 = vtanh.f32 %v2454_v23 }
 0x42b   :  { %v2046_v38 = vpop.eup %2045 }
 0x42c   :  { %v786_v43 = vmul.f32 %v2046_v38, %v781_v37 }
 0x42e   :  { %857 = vmatmul.mubr.f32.vlgmr.msra.gmra.mrb[8].mxu0 %v786_v43  ;;  %928 = vmatmul.mubr.f32.vlgmr.msra.gmra.mrb[8].mxu1 %v786_v43 }
 0x42f   :  { %1812 = vmatpush1.bf16.msra.mxu0 %v2208_v8  ;;  %1844 = vmatpush1.bf16.msra.mxu1 %v2218_v18 }
 0x430   :  { %1814 = vmatprep.subr.bf16.mxu0 %v2210_v9  ;;  %1846 = vmatprep.subr.bf16.mxu1 %v2224_v26 }
 0x431   :  { %1025 = vmatprep.mubr.f32.mxu0 %v2163_v0  ;;  %1096 = vmatprep.mubr.f32.mxu1 %v2163_v0 }
 0x433   :  { %1816 = vmatpush1.bf16.msra.mxu0 %v2214_v16  ;;  %1848 = vmatpush1.bf16.msra.mxu1 %v2227_v30 }
 0x434   :  { %1818 = vmatprep.subr.bf16.mxu0 %v2221_v22  ;;  %1850 = vmatprep.subr.bf16.mxu1 %v2236_v39 }
 0x437   :  { %1820 = vmatpush1.bf16.msra.mxu0 %v2230_v32  ;;  %1852 = vmatpush1.bf16.msra.mxu1 %v2239_v44 }
 0x438   :  { %1822 = vmatprep.subr.bf16.mxu0 %v2234_v36  ;;  %1854 = vmatprep.subr.bf16.mxu1 %v2245_v48 }
 0x43b   :  { %1824 = vmatpush1.bf16.msra.mxu0 %v2242_v46  ;;  %1856 = vmatpush1.bf16.msra.mxu1 %v2251_v57 }
 0x43c   :  { %1826 = vmatprep.subr.bf16.mxu0 %v2248_v51  ;;  %1858 = vmatprep.subr.bf16.mxu1 %v2257_v60 }
 0x43f   :  { %1828 = vmatpush1.bf16.msra.mxu0 %v2254_v58  ;;  %1860 = vmatpush1.bf16.msra.mxu1 %v2263_v7 }
 0x440   :  { %1830 = vmatprep.subr.bf16.mxu0 %v2260_v63  ;;  %1862 = vmatprep.subr.bf16.mxu1 %v2269_v12 }
 0x443   :  { %1832 = vmatpush1.bf16.msra.mxu0 %v2266_v10  ;;  %1864 = vmatpush1.bf16.msra.mxu1 %v2275_v25 }
 0x444   :  { %1834 = vmatprep.subr.bf16.mxu0 %v2272_v15  ;;  %1866 = vmatprep.subr.bf16.mxu1 %v2281_v29 }
 0x447   :  { %1836 = vmatpush1.bf16.msra.mxu0 %v2278_v27  ;;  %1868 = vmatpush1.bf16.msra.mxu1 %v2287_v40 }
 0x448   :  { %1838 = vmatprep.subr.bf16.mxu0 %v2284_v34  ;;  %1870 = vmatprep.subr.bf16.mxu1 %v2293_v42 }
 0x44b   :  { %1840 = vmatpush1.bf16.msra.mxu0 %v2290_v41  ;;  %1872 = vmatpush1.bf16.msra.mxu1 %v2297_v47 }
 0x44c   :  { %1874 = vmatprep.subr.bf16.mxu0 %v2206_v4  ;;  %1906 = vmatprep.subr.bf16.mxu1 %v2216_v17 }
 0x501   :  { %v858_v31 = vpop.f32.mrb[8].mxu0  ;;  %v929_v45 = vpop.f32.mrb[8].mxu1 }
 0x502   :  { %v934_v49 = vadd.f32 %v858_v31, %v788_v24  ;;  %v860_v50 = vpop.f32.mrb[9].mxu0  ;;  %v931_v52 = vpop.f32.mrb[9].mxu1  ;;  %v936_v59 = vadd.f32 %v929_v45, %v790_v53  ;;  %v958_v24 = vld [vmem:[#allocation4 + $0xa8] sm:$0xff] }
 0x503   :  { %v935_v54 = vadd.f32 %v860_v50, %v789_v28  ;;  %v937_v62 = vadd.f32 %v931_v52, %v791_v61  ;;  %v959_v52 = vld [vmem:[#allocation4 + $0xb0] sm:$0xff] }
 0x504   :  { %v938_v55 = vmul.f32 0.5, %v934_v49 }
 0x505   :  { %v942_v56 = vmul.f32 0.5, %v935_v54  ;;  %v947_v1 = vmul.f32 0.5, %v937_v62 }
 0x506   :  { %2047 = vtanh.f32 %v938_v55 }
 0x507   :  { %2049 = vtanh.f32 %v942_v56 }
 0x508   :  { %2051 = vtanh.f32 %v936_v59  ;;  %v960_v59 = vld [vmem:[#allocation4 + $0xb8] sm:$0xff] }
 0x509   :  { %2053 = vtanh.f32 %v947_v1 }
 0x510   :  { %v2048_v2 = vpop.eup %2047 }
 0x511   :  { %v2050_v3 = vpop.eup %2049  ;;  %v940_v5 = vmul.f32 0.5, %v2048_v2 }
 0x512   :  { %v944_v6 = vmul.f32 0.5, %v2050_v3  ;;  %v2052_v13 = vpop.eup %2051 }
 0x513   :  { %v941_v11 = vadd.f32 0.5, %v940_v5  ;;  %v2054_v33 = vpop.eup %2053 }
 0x514   :  { %v945_v14 = vadd.f32 0.5, %v944_v6  ;;  %v949_v35 = vmul.f32 0.5, %v2054_v33 }
 0x515   :  { %v952_v19 = vmul.f32 %v2052_v13, %v941_v11 }
 0x516   :  { %v951_v20 = vmul.f32 %v945_v14, %v2454_v23  ;;  %v950_v37 = vadd.f32 0.5, %v949_v35  ;;  %v957_v23 = vld [vmem:[#allocation4 + $0xa0] sm:$0xff] }
 0x518   :  { %v2492_v21 = vadd.f32 %v952_v19, %v951_v20 }
 0x51a   :  { %2055 = vtanh.f32 %v2492_v21 }
 0x524   :  { %v2056_v38 = vpop.eup %2055 }
 0x525   :  { %v955_v43 = vmul.f32 %v2056_v38, %v950_v37 }
 0x527   :  { %1026 = vmatmul.mubr.f32.vlgmr.msra.gmra.mrb[10].mxu0 %v955_v43  ;;  %1097 = vmatmul.mubr.f32.vlgmr.msra.gmra.mrb[10].mxu1 %v955_v43 }
 0x528   :  { %1876 = vmatpush1.bf16.msra.mxu0 %v2208_v8  ;;  %1908 = vmatpush1.bf16.msra.mxu1 %v2218_v18 }
 0x529   :  { %1878 = vmatprep.subr.bf16.mxu0 %v2210_v9  ;;  %1910 = vmatprep.subr.bf16.mxu1 %v2224_v26 }
 0x52a   :  { %1194 = vmatprep.mubr.f32.mxu0 %v2163_v0  ;;  %1265 = vmatprep.mubr.f32.mxu1 %v2163_v0 }
 0x52c   :  { %1880 = vmatpush1.bf16.msra.mxu0 %v2214_v16  ;;  %1912 = vmatpush1.bf16.msra.mxu1 %v2227_v30 }
 0x52d   :  { %1882 = vmatprep.subr.bf16.mxu0 %v2221_v22  ;;  %1914 = vmatprep.subr.bf16.mxu1 %v2236_v39 }
 0x530   :  { %1884 = vmatpush1.bf16.msra.mxu0 %v2230_v32  ;;  %1916 = vmatpush1.bf16.msra.mxu1 %v2239_v44 }
 0x531   :  { %1886 = vmatprep.subr.bf16.mxu0 %v2234_v36  ;;  %1918 = vmatprep.subr.bf16.mxu1 %v2245_v48 }
 0x534   :  { %1888 = vmatpush1.bf16.msra.mxu0 %v2242_v46  ;;  %1920 = vmatpush1.bf16.msra.mxu1 %v2251_v57 }
 0x535   :  { %1890 = vmatprep.subr.bf16.mxu0 %v2248_v51  ;;  %1922 = vmatprep.subr.bf16.mxu1 %v2257_v60 }
 0x538   :  { %1892 = vmatpush1.bf16.msra.mxu0 %v2254_v58  ;;  %1924 = vmatpush1.bf16.msra.mxu1 %v2263_v7 }
 0x539   :  { %1894 = vmatprep.subr.bf16.mxu0 %v2260_v63  ;;  %1926 = vmatprep.subr.bf16.mxu1 %v2269_v12 }
 0x53c   :  { %1896 = vmatpush1.bf16.msra.mxu0 %v2266_v10  ;;  %1928 = vmatpush1.bf16.msra.mxu1 %v2275_v25 }
 0x53d   :  { %1898 = vmatprep.subr.bf16.mxu0 %v2272_v15  ;;  %1930 = vmatprep.subr.bf16.mxu1 %v2281_v29 }
 0x540   :  { %1900 = vmatpush1.bf16.msra.mxu0 %v2278_v27  ;;  %1932 = vmatpush1.bf16.msra.mxu1 %v2287_v40 }
 0x541   :  { %1902 = vmatprep.subr.bf16.mxu0 %v2284_v34  ;;  %1934 = vmatprep.subr.bf16.mxu1 %v2293_v42 }
 0x544   :  { %1904 = vmatpush1.bf16.msra.mxu0 %v2290_v41  ;;  %1936 = vmatpush1.bf16.msra.mxu1 %v2297_v47 }
 0x545   :  { %1938 = vmatprep.subr.bf16.mxu0 %v2206_v4  ;;  %1970 = vmatprep.subr.bf16.mxu1 %v2216_v17 }
 0x5fa   :  { %v1027_v28 = vpop.f32.mrb[10].mxu0  ;;  %v1098_v31 = vpop.f32.mrb[10].mxu1 }
 0x5fb   :  { %v1103_v45 = vadd.f32 %v1027_v28, %v957_v23  ;;  %v1029_v49 = vpop.f32.mrb[11].mxu0  ;;  %v1100_v50 = vpop.f32.mrb[11].mxu1  ;;  %v1105_v56 = vadd.f32 %v1098_v31, %v959_v52  ;;  %v1297_v31 = vld [vmem:[#allocation4 + $0xf0] sm:$0xff] }
 0x5fc   :  { %v1104_v53 = vadd.f32 %v1029_v49, %v958_v24  ;;  %v1106_v61 = vadd.f32 %v1100_v50, %v960_v59 }
 0x5fd   :  { %v1107_v54 = vmul.f32 0.5, %v1103_v45 }
 0x5fe   :  { %v1111_v55 = vmul.f32 0.5, %v1104_v53  ;;  %v1116_v4 = vmul.f32 0.5, %v1106_v61  ;;  %v1298_v53 = vld [vmem:[#allocation4 + $0xf8] sm:$0xff] }
 0x5ff   :  { %2057 = vtanh.f32 %v1107_v54 }
 0x600   :  { %2059 = vtanh.f32 %v1111_v55 }
 0x601   :  { %2061 = vtanh.f32 %v1105_v56 }
 0x602   :  { %2063 = vtanh.f32 %v1116_v4 }
 0x609   :  { %v2058_v62 = vpop.eup %2057 }
 0x60a   :  { %v2060_v17 = vpop.eup %2059  ;;  %v1109_v1 = vmul.f32 0.5, %v2058_v62 }
 0x60b   :  { %v1113_v2 = vmul.f32 0.5, %v2060_v17  ;;  %v2062_v5 = vpop.eup %2061 }
 0x60c   :  { %v1110_v3 = vadd.f32 0.5, %v1109_v1  ;;  %v2064_v19 = vpop.eup %2063 }
 0x60d   :  { %v1114_v6 = vadd.f32 0.5, %v1113_v2  ;;  %v1118_v20 = vmul.f32 0.5, %v2064_v19 }
 0x60e   :  { %v1121_v11 = vmul.f32 %v2062_v5, %v1110_v3 }
 0x60f   :  { %v1120_v13 = vmul.f32 %v1114_v6, %v2492_v21  ;;  %v1119_v33 = vadd.f32 0.5, %v1118_v20  ;;  %v1296_v21 = vld [vmem:[#allocation4 + $0xe8] sm:$0xff] }
 0x611   :  { %v2530_v14 = vadd.f32 %v1121_v11, %v1120_v13 }
 0x613   :  { %2065 = vtanh.f32 %v2530_v14 }
 0x61d   :  { %v2066_v35 = vpop.eup %2065 }
 0x61e   :  { %v1124_v37 = vmul.f32 %v2066_v35, %v1119_v33 }
 0x620   :  { %1195 = vmatmul.mubr.f32.vlgmr.msra.gmra.mrb[12].mxu0 %v1124_v37  ;;  %1266 = vmatmul.mubr.f32.vlgmr.msra.gmra.mrb[12].mxu1 %v1124_v37 }
 0x621   :  { %1940 = vmatpush1.bf16.msra.mxu0 %v2208_v8  ;;  %1972 = vmatpush1.bf16.msra.mxu1 %v2218_v18  ;;  %v1127_v8 = vld [vmem:[#allocation4 + $0xc8] sm:$0xff] }
 0x622   :  { %1942 = vmatprep.subr.bf16.mxu0 %v2210_v9  ;;  %1974 = vmatprep.subr.bf16.mxu1 %v2224_v26 }
 0x623   :  { %1363 = vmatprep.mubr.f32.mxu0 %v2163_v0  ;;  %1434 = vmatprep.mubr.f32.mxu1 %v2163_v0  ;;  %v1126_v0 = vld [vmem:[#allocation4 + $0xc0] sm:$0xff] }
 0x625   :  { %1944 = vmatpush1.bf16.msra.mxu0 %v2214_v16  ;;  %1976 = vmatpush1.bf16.msra.mxu1 %v2227_v30  ;;  %v1128_v30 = vld [vmem:[#allocation4 + $0xd0] sm:$0xff] }
 0x626   :  { %1946 = vmatprep.subr.bf16.mxu0 %v2221_v22  ;;  %1978 = vmatprep.subr.bf16.mxu1 %v2236_v39 }
 0x629   :  { %1948 = vmatpush1.bf16.msra.mxu0 %v2230_v32  ;;  %1980 = vmatpush1.bf16.msra.mxu1 %v2239_v44 }
 0x62a   :  { %1950 = vmatprep.subr.bf16.mxu0 %v2234_v36  ;;  %1982 = vmatprep.subr.bf16.mxu1 %v2245_v48 }
 0x62d   :  { %1952 = vmatpush1.bf16.msra.mxu0 %v2242_v46  ;;  %1984 = vmatpush1.bf16.msra.mxu1 %v2251_v57  ;;  %v1129_v46 = vld [vmem:[#allocation4 + $0xd8] sm:$0xff] }
 0x62e   :  { %1954 = vmatprep.subr.bf16.mxu0 %v2248_v51  ;;  %1986 = vmatprep.subr.bf16.mxu1 %v2257_v60 }
 0x631   :  { %1956 = vmatpush1.bf16.msra.mxu0 %v2254_v58  ;;  %1988 = vmatpush1.bf16.msra.mxu1 %v2263_v7 }
 0x632   :  { %1958 = vmatprep.subr.bf16.mxu0 %v2260_v63  ;;  %1990 = vmatprep.subr.bf16.mxu1 %v2269_v12 }
 0x635   :  { %1960 = vmatpush1.bf16.msra.mxu0 %v2266_v10  ;;  %1992 = vmatpush1.bf16.msra.mxu1 %v2275_v25 }
 0x636   :  { %1962 = vmatprep.subr.bf16.mxu0 %v2272_v15  ;;  %1994 = vmatprep.subr.bf16.mxu1 %v2281_v29 }
 0x639   :  { %1964 = vmatpush1.bf16.msra.mxu0 %v2278_v27  ;;  %1996 = vmatpush1.bf16.msra.mxu1 %v2287_v40 }
 0x63a   :  { %1966 = vmatprep.subr.bf16.mxu0 %v2284_v34  ;;  %1998 = vmatprep.subr.bf16.mxu1 %v2293_v42 }
 0x63d   :  { %1968 = vmatpush1.bf16.msra.mxu0 %v2290_v41  ;;  %2000 = vmatpush1.bf16.msra.mxu1 %v2297_v47  ;;  %v1295_v47 = vld [vmem:[#allocation4 + $0xe0] sm:$0xff] }
 0x6f3   :  { %v1196_v9 = vpop.f32.mrb[12].mxu0  ;;  %v1267_v16 = vpop.f32.mrb[12].mxu1 }
 0x6f4   :  { %v1272_v18 = vadd.f32 %v1196_v9, %v1126_v0  ;;  %v1198_v22 = vpop.f32.mrb[13].mxu0  ;;  %v1269_v26 = vpop.f32.mrb[13].mxu1  ;;  %v1274_v44 = vadd.f32 %v1267_v16, %v1128_v30 }
 0x6f5   :  { %v1273_v32 = vadd.f32 %v1198_v22, %v1127_v8  ;;  %v1275_v48 = vadd.f32 %v1269_v26, %v1129_v46 }
 0x6f6   :  { %v1276_v36 = vmul.f32 0.5, %v1272_v18 }
 0x6f7   :  { %v1280_v39 = vmul.f32 0.5, %v1273_v32  ;;  %v1285_v51 = vmul.f32 0.5, %v1275_v48 }
 0x6f8   :  { %2067 = vtanh.f32 %v1276_v36 }
 0x6f9   :  { %2069 = vtanh.f32 %v1280_v39 }
 0x6fa   :  { %2071 = vtanh.f32 %v1274_v44 }
 0x6fb   :  { %2073 = vtanh.f32 %v1285_v51 }
 0x702   :  { %v2068_v57 = vpop.eup %2067 }
 0x703   :  { %v2070_v58 = vpop.eup %2069  ;;  %v1278_v60 = vmul.f32 0.5, %v2068_v57 }
 0x704   :  { %v1282_v63 = vmul.f32 0.5, %v2070_v58  ;;  %v2072_v10 = vpop.eup %2071 }
 0x705   :  { %v1279_v7 = vadd.f32 0.5, %v1278_v60  ;;  %v2074_v29 = vpop.eup %2073 }
 0x706   :  { %v1283_v12 = vadd.f32 0.5, %v1282_v63  ;;  %v1287_v34 = vmul.f32 0.5, %v2074_v29 }
 0x707   :  { %v1290_v15 = vmul.f32 %v2072_v10, %v1279_v7 }
 0x708   :  { %v1289_v25 = vmul.f32 %v1283_v12, %v2530_v14  ;;  %v1288_v40 = vadd.f32 0.5, %v1287_v34 }
 0x70a   :  { %v1291_v27 = vadd.f32 %v1290_v15, %v1289_v25 }
 0x70c   :  { %2075 = vtanh.f32 %v1291_v27 }
 0x716   :  { %v2076_v41 = vpop.eup %2075 }
 0x717   :  { %v1293_v42 = vmul.f32 %v2076_v41, %v1288_v40 }
 0x719   :  { %1364 = vmatmul.mubr.f32.vlgmr.msra.gmra.mrb[14].mxu0 %v1293_v42  ;;  %1435 = vmatmul.mubr.f32.vlgmr.msra.gmra.mrb[14].mxu1 %v1293_v42 }
 0x7ec   :  { %v1365_v38 = vpop.f32.mrb[14].mxu0  ;;  %v1436_v43 = vpop.f32.mrb[14].mxu1 }
 0x7ed   :  { %v1441_v23 = vadd.f32 %v1365_v38, %v1295_v47  ;;  %v1367_v24 = vpop.f32.mrb[15].mxu0  ;;  %v1438_v28 = vpop.f32.mrb[15].mxu1  ;;  %v1443_v52 = vadd.f32 %v1436_v43, %v1297_v31 }
 0x7ee   :  { %v1442_v45 = vadd.f32 %v1367_v24, %v1296_v21  ;;  %v1444_v54 = vadd.f32 %v1438_v28, %v1298_v53 }
 0x7ef   :  { %v1445_v49 = vmul.f32 0.5, %v1441_v23 }
 0x7f0   :  { %v1449_v50 = vmul.f32 0.5, %v1442_v45  ;;  %v1454_v55 = vmul.f32 0.5, %v1444_v54 }
 0x7f1   :  { %2077 = vtanh.f32 %v1445_v49 }
 0x7f2   :  { %2079 = vtanh.f32 %v1449_v50 }
 0x7f3   :  { %2081 = vtanh.f32 %v1443_v52 }
 0x7f4   :  { %2083 = vtanh.f32 %v1454_v55 }
 0x7fb   :  { %v2078_v56 = vpop.eup %2077 }
 0x7fc   :  { %v2080_v59 = vpop.eup %2079  ;;  %v1447_v61 = vmul.f32 0.5, %v2078_v56 }
 0x7fd   :  { %v1451_v4 = vmul.f32 0.5, %v2080_v59  ;;  %v2082_v17 = vpop.eup %2081 }
 0x7fe   :  { %v1448_v62 = vadd.f32 0.5, %v1447_v61  ;;  %v2084_v6 = vpop.eup %2083 }
 0x7ff   :  { %v1452_v1 = vadd.f32 0.5, %v1451_v4  ;;  %v1456_v11 = vmul.f32 0.5, %v2084_v6 }
 0x800   :  { %v1459_v2 = vmul.f32 %v2082_v17, %v1448_v62 }
 0x801   :  { %v1458_v3 = vmul.f32 %v1452_v1, %v1291_v27  ;;  %v1457_v13 = vadd.f32 0.5, %v1456_v11 }
 0x803   :  { %v1460_v5 = vadd.f32 %v1459_v2, %v1458_v3 }
 0x805   :  { %2085 = vtanh.f32 %v1460_v5 }
 0x80f   :  { %v2086_v14 = vpop.eup %2085 }
 0x810   :  { %v1462_v19 = vmul.f32 %v2086_v14, %v1457_v13 }
 0x812   :  { %1472 = vst [vmem:[#allocation9] sm:$0xff] %v1462_v19 }
 0x813   :  { %2142 = shalt.err (!%p2139_p6)
}
 0x814   :  { %s2143_s10 = scalar_lea.hbm %s2580_s2, 128 }
 0x815   :  { %p2144_p7 = scmp.ne.s32.totalorder %s2580_s2, %s2143_s10  ;;  %p2147_p8 = scmp.lt.u32.totalorder %s2143_s10, %s2580_s2 }
 0x817   :  { %p2149_p9 = pnand %p2147_p8, %p2144_p7 }
 0x819   :  { %2152 = shalt.err (!%p2149_p9)
}
 0x81a   :  { %1482 = dma.vmem_to_hbm [thread:$0]  %s1480_s6, 128, %s2580_s2, [#allocation6]  }
 0x81b   :  { %2157 = dma.done.wait [#allocation6], 128  }
 0x81c   :  { %2158 = vsyncadd [#allocation6], 4294967168 }
 0x81d   :  { %1486 = vsyncpa [#allocation5], 1 }
 0x81e   :  { %1487 = vsyncpa [#allocation8], 1 }
 0x81f   :  { %1488 = vsyncpa [#allocation6], 1 }

</bundles_post_ra>
